<compile_context>
chip_gen: v7x
topology: tpu7x:2x2x1
jax: 0.10.0
libtpu: 0.0.40
codegen_flags: <defaults>
</compile_context>

<pallas_src>
import jax
import jax.numpy as jnp
from jax.experimental import pallas as pl
from jax.experimental.pallas import tpu as pltpu


INPUT_SIZE = 2
HIDDEN = 128
ARC_DIM = 3
NEG_SLOPE = 0.01  # PyTorch LeakyReLU default

# Only split a batch into multiple grid steps once it is at least this big;
# below that the ~0.35 us per-step overhead outweighs any v7x dual-TC win.
_MIN_ROWS_FOR_SPLIT = 1024


def _leaky_relu(x):
    # slope < 1  =>  max(x, slope*x) == leaky_relu(x); cheaper than where().
    return jnp.maximum(x, NEG_SLOPE * x)


def _round_up(n, m):
    return ((n + m - 1) // m) * m


def actionable_rep_kernel(
    x_ref,                       # (tile, INPUT_SIZE)
    w1_ref, b1_ref,              # (INPUT_SIZE, 128), (1, 128)
    w2_ref, b2_ref,              # (128, 128), (1, 128)
    w3_ref, b3_ref,              # (128, 128), (1, 128)
    w4p_ref, b4p_ref,            # zero-padded to (128, 128) / (1, 128)
    o_ref,                       # (tile, ARC_DIM) — narrow writeback
):
    x = x_ref[...].astype(jnp.float32)          # (T, INPUT_SIZE)

    # --- Layer 1: K = INPUT_SIZE (tiny) -> VPU broadcast-FMAs, not the MXU.
    h = b1_ref[...]                             # (1, HIDDEN) broadcasts up
    for k in range(x_ref.shape[1]):             # static, tiny trip count
        h = h + x[:, k:k + 1] * w1_ref[k:k + 1, :]
    h = _leaky_relu(h)                          # (T, HIDDEN)

    # --- Layers 2 & 3: 128x128 f32 matmuls on the MXU, f32 accumulation.
    h = jnp.dot(h, w2_ref[...], preferred_element_type=jnp.float32) + b2_ref[...]
    h = _leaky_relu(h)

    h = jnp.dot(h, w3_ref[...], preferred_element_type=jnp.float32) + b3_ref[...]
    h = _leaky_relu(h)

    # --- Layer 4: clean 128-wide MXU matmul on padded weights, then store
    # only the 3 real output lanes (narrow, masked store — but only 12 B/row
    # of HBM writeback instead of 512 B/row + a separate slice pass).
    out = jnp.dot(h, w4p_ref[...], preferred_element_type=jnp.float32) + b4p_ref[...]
    o_ref[...] = out[:, :ARC_DIM].astype(o_ref.dtype)


def prepare_params(params):
    """One-time prep: zero-pad the 3-wide output layer to 128 MXU columns.

    Hoisted out of the per-call forward so the padding ops / extra weight copy
    are not re-launched on every microsecond-scale forward call.
    """
    w1, b1, w2, b2, w3, b3, w4, b4 = params
    w4p = jnp.zeros((HIDDEN, HIDDEN), jnp.float32).at[:, :ARC_DIM].set(w4)
    b4p = jnp.zeros((1, HIDDEN), jnp.float32).at[:, :ARC_DIM].set(b4)
    return (w1, b1, w2, b2, w3, b3, w4p, b4p)


def actionable_rep_forward(x, prepared_params, *, batch_tile=4096):
    """x: (B, INPUT_SIZE) float32 -> (B, ARC_DIM) float32.

    `prepared_params` is the output of prepare_params().
    """
    w1, b1, w2, b2, w3, b3, w4p, b4p = prepared_params
    B, in_dim = x.shape
    assert in_dim == INPUT_SIZE

    # Balanced tile selection: fewest steps with tile <= batch_tile, then
    # balance rows across steps (padding waste < 8 rows per step).  Force
    # >= 2 steps for large batches so v7x's two TensorCores both get work.
    num_steps = pl.cdiv(B, batch_tile)
    if B >= 2 * _MIN_ROWS_FOR_SPLIT:
        num_steps = max(num_steps, 2)
    tile = _round_up(pl.cdiv(B, num_steps), 8)
    B_pad = num_steps * tile
    if B_pad != B:
        x = jnp.pad(x, ((0, B_pad - B), (0, 0)))

    # Weights/biases: one block == the full array, same block every grid step
    # (Pallas keeps them resident; constant index_map => no per-step re-DMA).
    def whole(arr):
        return pl.BlockSpec(arr.shape, lambda i: (0, 0))

    out = pl.pallas_call(
        actionable_rep_kernel,
        out_shape=jax.ShapeDtypeStruct((B_pad, ARC_DIM), jnp.float32),
        grid_spec=pltpu.PrefetchScalarGridSpec(
            num_scalar_prefetch=0,
            grid=(num_steps,),
            in_specs=[
                pl.BlockSpec((tile, INPUT_SIZE), lambda i: (i, 0)),
                whole(w1), whole(b1),
                whole(w2), whole(b2),
                whole(w3), whole(b3),
                whole(w4p), whole(b4p),
            ],
            # Last block dim (ARC_DIM=3) equals the full array dim -> legal.
            out_specs=pl.BlockSpec((tile, ARC_DIM), lambda i: (i, 0)),
        ),
        compiler_params=pltpu.CompilerParams(
            # Batch axis is embarrassingly parallel.  (On v7x one could try
            # pltpu.CORE_PARALLEL here; kept portable across v5e/v6e/v7x.)
            dimension_semantics=("parallel",),
            # ~4 MiB of live (tile,128) f32 temps at tile=4096 + <0.5 MiB of
            # weights; 32 MiB is safe on all of v5e/v6e/v7x (v7x: 64 MiB phys).
            vmem_limit_bytes=32 * 1024 * 1024,
        ),
    )(x, w1, b1, w2, b2, w3, b3, w4p, b4p)

    return out[:B] if B_pad != B else out


def init_params(key):
    """Deterministic synthetic init (shapes match the PyTorch module)."""
    keys = jax.random.split(key, 8)

    def linear(kw, kb, fan_in, fan_out):
        # Uniform(-1/sqrt(fan_in), 1/sqrt(fan_in)) like PyTorch's default.
        bound = 1.0 / jnp.sqrt(jnp.float32(fan_in))
        w = jax.random.uniform(kw, (fan_in, fan_out), jnp.float32, -bound, bound)
        b = jax.random.uniform(kb, (1, fan_out), jnp.float32, -bound, bound)
        return w, b

    w1, b1 = linear(keys[0], keys[1], INPUT_SIZE, HIDDEN)
    w2, b2 = linear(keys[2], keys[3], HIDDEN, HIDDEN)
    w3, b3 = linear(keys[4], keys[5], HIDDEN, HIDDEN)
    w4, b4 = linear(keys[6], keys[7], HIDDEN, ARC_DIM)
    return (w1, b1, w2, b2, w3, b3, w4, b4)


def reference_forward(x, params):
    w1, b1, w2, b2, w3, b3, w4, b4 = params
    h = _leaky_relu(x @ w1 + b1)
    h = _leaky_relu(h @ w2 + b2)
    h = _leaky_relu(h @ w3 + b3)
    return h @ w4 + b4


if __name__ == "__main__":
    key = jax.random.PRNGKey(0)
    k_params, k_x = jax.random.split(key)

    params = init_params(k_params)
    prepared = prepare_params(params)

    # Small, non-multiple-of-8 batch to exercise the row-padding + trim path.
    B = 203
    x = jax.random.normal(k_x, (B, INPUT_SIZE), jnp.float32)

    out = actionable_rep_forward(x, prepared)
    out = jax.block_until_ready(out)

    ref = reference_forward(x, params)
    assert out.shape == (B, ARC_DIM)
    assert jnp.allclose(out, ref, atol=1e-4, rtol=1e-4)

    print("KERNEL_OK")
</pallas_src>

<mosaic_0001>
module attributes {stable_mosaic.version = 11 : i64} {
  func.func @actionable_rep_kernel(%arg0: i32, %arg1: memref<208x2xf32, #tpu.memory_space<vmem>>, %arg2: memref<2x128xf32, #tpu.memory_space<vmem>>, %arg3: memref<1x128xf32, #tpu.memory_space<vmem>>, %arg4: memref<128x128xf32, #tpu.memory_space<vmem>>, %arg5: memref<1x128xf32, #tpu.memory_space<vmem>>, %arg6: memref<128x128xf32, #tpu.memory_space<vmem>>, %arg7: memref<1x128xf32, #tpu.memory_space<vmem>>, %arg8: memref<128x128xf32, #tpu.memory_space<vmem>>, %arg9: memref<1x128xf32, #tpu.memory_space<vmem>>, %arg10: memref<208x3xf32, #tpu.memory_space<vmem>>) attributes {dimension_semantics = [#tpu.dimension_semantics<parallel>], iteration_bounds = array<i64: 1>, scalar_prefetch = 0 : i64, scratch_operands = 0 : i64, tpu.core_type = #tpu.core_type<tc>, window_params = [{transform_indices = @transform_0, window_bounds = array<i64: 208, 2>}, {pipeline_mode = #tpu.pipeline_mode<synchronous>, transform_indices = @transform_1, window_bounds = array<i64: 2, 128>}, {pipeline_mode = #tpu.pipeline_mode<synchronous>, transform_indices = @transform_2, window_bounds = array<i64: 1, 128>}, {pipeline_mode = #tpu.pipeline_mode<synchronous>, transform_indices = @transform_3, window_bounds = array<i64: 128, 128>}, {pipeline_mode = #tpu.pipeline_mode<synchronous>, transform_indices = @transform_4, window_bounds = array<i64: 1, 128>}, {pipeline_mode = #tpu.pipeline_mode<synchronous>, transform_indices = @transform_5, window_bounds = array<i64: 128, 128>}, {pipeline_mode = #tpu.pipeline_mode<synchronous>, transform_indices = @transform_6, window_bounds = array<i64: 1, 128>}, {pipeline_mode = #tpu.pipeline_mode<synchronous>, transform_indices = @transform_7, window_bounds = array<i64: 128, 128>}, {pipeline_mode = #tpu.pipeline_mode<synchronous>, transform_indices = @transform_8, window_bounds = array<i64: 1, 128>}, {transform_indices = @transform_9, window_bounds = array<i64: 208, 3>}]} {
    %c0 = arith.constant 0 : index
    %c0_0 = arith.constant 0 : index
    %0 = vector.load %arg1[%c0, %c0_0] : memref<208x2xf32, #tpu.memory_space<vmem>>, vector<208x2xf32>
    %c0_1 = arith.constant 0 : index
    %c0_2 = arith.constant 0 : index
    %1 = vector.load %arg3[%c0_1, %c0_2] : memref<1x128xf32, #tpu.memory_space<vmem>>, vector<1x128xf32>
    %2 = vector.extract_strided_slice %0 {offsets = [0, 0], sizes = [208, 1], strides = [1, 1]} : vector<208x2xf32> to vector<208x1xf32>
    %c0_3 = arith.constant 0 : index
    %c0_4 = arith.constant 0 : index
    %3 = vector.load %arg2[%c0_3, %c0_4] : memref<2x128xf32, #tpu.memory_space<vmem>>, vector<1x128xf32>
    %4 = vector.broadcast %2 : vector<208x1xf32> to vector<208x128xf32>
    %5 = vector.broadcast %3 : vector<1x128xf32> to vector<208x128xf32>
    %6 = arith.mulf %4, %5 : vector<208x128xf32>
    %7 = vector.broadcast %1 : vector<1x128xf32> to vector<208x128xf32>
    %8 = arith.addf %7, %6 : vector<208x128xf32>
    %9 = vector.extract_strided_slice %0 {offsets = [0, 1], sizes = [208, 1], strides = [1, 1]} : vector<208x2xf32> to vector<208x1xf32>
    %c1 = arith.constant 1 : index
    %c0_5 = arith.constant 0 : index
    %10 = vector.load %arg2[%c1, %c0_5] : memref<2x128xf32, #tpu.memory_space<vmem>>, vector<1x128xf32>
    %11 = vector.broadcast %9 : vector<208x1xf32> to vector<208x128xf32>
    %12 = vector.broadcast %10 : vector<1x128xf32> to vector<208x128xf32>
    %13 = arith.mulf %11, %12 : vector<208x128xf32>
    %14 = arith.addf %8, %13 : vector<208x128xf32>
    %cst = arith.constant 0.00999999977 : f32
    %15 = vector.broadcast %cst : f32 to vector<208x128xf32>
    %16 = arith.mulf %15, %14 : vector<208x128xf32>
    %17 = arith.maximumf %14, %16 : vector<208x128xf32>
    %c0_6 = arith.constant 0 : index
    %c0_7 = arith.constant 0 : index
    %18 = vector.load %arg4[%c0_6, %c0_7] : memref<128x128xf32, #tpu.memory_space<vmem>>, vector<128x128xf32>
    %cst_8 = arith.constant dense<0.000000e+00> : vector<208x128xf32>
    %19 = tpu.matmul %17, %18, %cst_8 {dimension_numbers = #tpu.dot_dimension_numbers<[1], [0], [0], [1], [0, 0, 1, 1], [], []>} : vector<208x128xf32>, vector<128x128xf32>, vector<208x128xf32> -> vector<208x128xf32>
    %c0_9 = arith.constant 0 : index
    %c0_10 = arith.constant 0 : index
    %20 = vector.load %arg5[%c0_9, %c0_10] : memref<1x128xf32, #tpu.memory_space<vmem>>, vector<1x128xf32>
    %21 = vector.broadcast %20 : vector<1x128xf32> to vector<208x128xf32>
    %22 = arith.addf %19, %21 : vector<208x128xf32>
    %cst_11 = arith.constant 0.00999999977 : f32
    %23 = vector.broadcast %cst_11 : f32 to vector<208x128xf32>
    %24 = arith.mulf %23, %22 : vector<208x128xf32>
    %25 = arith.maximumf %22, %24 : vector<208x128xf32>
    %c0_12 = arith.constant 0 : index
    %c0_13 = arith.constant 0 : index
    %26 = vector.load %arg6[%c0_12, %c0_13] : memref<128x128xf32, #tpu.memory_space<vmem>>, vector<128x128xf32>
    %cst_14 = arith.constant dense<0.000000e+00> : vector<208x128xf32>
    %27 = tpu.matmul %25, %26, %cst_14 {dimension_numbers = #tpu.dot_dimension_numbers<[1], [0], [0], [1], [0, 0, 1, 1], [], []>} : vector<208x128xf32>, vector<128x128xf32>, vector<208x128xf32> -> vector<208x128xf32>
    %c0_15 = arith.constant 0 : index
    %c0_16 = arith.constant 0 : index
    %28 = vector.load %arg7[%c0_15, %c0_16] : memref<1x128xf32, #tpu.memory_space<vmem>>, vector<1x128xf32>
    %29 = vector.broadcast %28 : vector<1x128xf32> to vector<208x128xf32>
    %30 = arith.addf %27, %29 : vector<208x128xf32>
    %cst_17 = arith.constant 0.00999999977 : f32
    %31 = vector.broadcast %cst_17 : f32 to vector<208x128xf32>
    %32 = arith.mulf %31, %30 : vector<208x128xf32>
    %33 = arith.maximumf %30, %32 : vector<208x128xf32>
    %c0_18 = arith.constant 0 : index
    %c0_19 = arith.constant 0 : index
    %34 = vector.load %arg8[%c0_18, %c0_19] : memref<128x128xf32, #tpu.memory_space<vmem>>, vector<128x128xf32>
    %cst_20 = arith.constant dense<0.000000e+00> : vector<208x128xf32>
    %35 = tpu.matmul %33, %34, %cst_20 {dimension_numbers = #tpu.dot_dimension_numbers<[1], [0], [0], [1], [0, 0, 1, 1], [], []>} : vector<208x128xf32>, vector<128x128xf32>, vector<208x128xf32> -> vector<208x128xf32>
    %c0_21 = arith.constant 0 : index
    %c0_22 = arith.constant 0 : index
    %36 = vector.load %arg9[%c0_21, %c0_22] : memref<1x128xf32, #tpu.memory_space<vmem>>, vector<1x128xf32>
    %37 = vector.broadcast %36 : vector<1x128xf32> to vector<208x128xf32>
    %38 = arith.addf %35, %37 : vector<208x128xf32>
    %39 = vector.extract_strided_slice %38 {offsets = [0, 0], sizes = [208, 3], strides = [1, 1]} : vector<208x128xf32> to vector<208x3xf32>
    %c0_23 = arith.constant 0 : index
    %c0_24 = arith.constant 0 : index
    %40 = vector.load %arg10[%c0_23, %c0_24] : memref<208x3xf32, #tpu.memory_space<vmem>>, vector<208x3xf32>
    tpu.vector_store %arg10[%c0_23, %c0_24], %39 {strides = array<i32>} : memref<208x3xf32, #tpu.memory_space<vmem>>, vector<208x3xf32>,
    return
  }
  func.func @transform_0(%arg0: i32) -> (i32, i32) {
    %c0_i32 = arith.constant 0 : i32
    %c0_i32_0 = arith.constant 0 : i32
    return %arg0, %c0_i32 : i32, i32
  }
  func.func @transform_1(%arg0: i32) -> (i32, i32) {
    %c0_i32 = arith.constant 0 : i32
    %c0_i32_0 = arith.constant 0 : i32
    %c0_i32_1 = arith.constant 0 : i32
    return %c0_i32, %c0_i32_0 : i32, i32
  }
  func.func @transform_2(%arg0: i32) -> (i32, i32) {
    %c0_i32 = arith.constant 0 : i32
    %c0_i32_0 = arith.constant 0 : i32
    %c0_i32_1 = arith.constant 0 : i32
    return %c0_i32, %c0_i32_0 : i32, i32
  }
  func.func @transform_3(%arg0: i32) -> (i32, i32) {
    %c0_i32 = arith.constant 0 : i32
    %c0_i32_0 = arith.constant 0 : i32
    %c0_i32_1 = arith.constant 0 : i32
    return %c0_i32, %c0_i32_0 : i32, i32
  }
  func.func @transform_4(%arg0: i32) -> (i32, i32) {
    %c0_i32 = arith.constant 0 : i32
    %c0_i32_0 = arith.constant 0 : i32
    %c0_i32_1 = arith.constant 0 : i32
    return %c0_i32, %c0_i32_0 : i32, i32
  }
  func.func @transform_5(%arg0: i32) -> (i32, i32) {
    %c0_i32 = arith.constant 0 : i32
    %c0_i32_0 = arith.constant 0 : i32
    %c0_i32_1 = arith.constant 0 : i32
    return %c0_i32, %c0_i32_0 : i32, i32
  }
  func.func @transform_6(%arg0: i32) -> (i32, i32) {
    %c0_i32 = arith.constant 0 : i32
    %c0_i32_0 = arith.constant 0 : i32
    %c0_i32_1 = arith.constant 0 : i32
    return %c0_i32, %c0_i32_0 : i32, i32
  }
  func.func @transform_7(%arg0: i32) -> (i32, i32) {
    %c0_i32 = arith.constant 0 : i32
    %c0_i32_0 = arith.constant 0 : i32
    %c0_i32_1 = arith.constant 0 : i32
    return %c0_i32, %c0_i32_0 : i32, i32
  }
  func.func @transform_8(%arg0: i32) -> (i32, i32) {
    %c0_i32 = arith.constant 0 : i32
    %c0_i32_0 = arith.constant 0 : i32
    %c0_i32_1 = arith.constant 0 : i32
    return %c0_i32, %c0_i32_0 : i32, i32
  }
  func.func @transform_9(%arg0: i32) -> (i32, i32) {
    %c0_i32 = arith.constant 0 : i32
    %c0_i32_0 = arith.constant 0 : i32
    return %arg0, %c0_i32 : i32, i32
  }
}

</mosaic_0001>

<bundles_post_ra>
// kernel: tpu_custom_call.1
= control target key start
LH: loop header
LB: loop body
LE: loop exit
PB: predicated region body
PF: predicated region fallthrough
CT: control target
= control target key end

     0   :  { %14 = vsyncpa [#allocation3], 0  ;;  %s2375_s0 = inlined_call_operand.vmem [shape: f32[208,2], index: 0, kind: input, shape index: {}]   ;;  %s2376_s1 = inlined_call_operand.vmem [shape: f32[2,128], index: 1, kind: input, shape index: {}]   ;;  %s2377_s2 = inlined_call_operand.vmem [shape: f32[1,128], index: 2, kind: input, shape index: {}]   ;;  %s2378_s3 = inlined_call_operand.vmem [shape: f32[128,128], index: 3, kind: input, shape index: {}]   ;;  %s2379_s4 = inlined_call_operand.vmem [shape: f32[1,128], index: 4, kind: input, shape index: {}]   ;;  %s2380_s5 = inlined_call_operand.hbm [shape: f32[128,128], index: 5, kind: input, shape index: {}]   ;;  %s2381_s6 = inlined_call_operand.vmem [shape: f32[1,128], index: 6, kind: input, shape index: {}]   ;;  %s2382_s7 = inlined_call_operand.hbm [shape: f32[128,128], index: 7, kind: input, shape index: {}]   ;;  %s2383_s8 = inlined_call_operand.vmem [shape: f32[1,128], index: 8, kind: input, shape index: {}]   ;;  %s2384_s9 = inlined_call_operand.vmem [shape: f32[208,3], index: 9, kind: output, shape index: {}]  }
   0x1   :  { %15 = vsyncpa [#allocation5], 0  ;;  %s1825_s30 = smov [#allocation2]   ;;  %s1777_s13 = scalar_lea.hbm %s2380_s5, 2048 }
   0x2   :  { %s31_s10 = sshll.u32 %s1825_s30, 4  ;;  %p1778_p0 = scmp.ne.s32.totalorder %s2380_s5, %s1777_s13  ;;  %s32_s10 = int_to_ptr.vmem [resolvable:$true] %s31_s10 }
   0x3   :  { %p1781_p1 = scmp.lt.u32.totalorder %s1777_s13, %s2380_s5 }
   0x5   :  { %p1783_p2 = pnand %p1781_p1, %p1778_p0 }
   0x7   :  { %1786 = shalt.err (!%p1783_p2)
}
   0x8   :  { %s1787_s18 = scalar_lea.vmem %s32_s10, 2048  ;;  %p1792_p4 = scmp.lt.s32.totalorder %s32_s10, %s32_s10 }
   0x9   :  { %p1788_p3 = scmp.ne.s32.totalorder %s32_s10, %s1787_s18  ;;  %p1793_p5 = scmp.lt.s32.totalorder %s1787_s18, %s1787_s18 }
   0xb   :  { %p1794_p6 = por %p1793_p5, %p1792_p4 }
   0xd   :  { %p1795_p7 = pnand %p1794_p6, %p1788_p3 }
   0xf   :  { %1798 = shalt.err (!%p1795_p7)
}
  0x10   :  { %s1826_s19 = smov 128   ;;  %s1827_s20 = smov 8  }
  0x11   :  { %37 = dma.hbm_to_vmem [thread:$0]  %s2380_s5, 2048, %s32_s10, [#allocation3], %s1826_s19, %s1826_s19, %s1827_s20  }
  0x12   :  { %s1828_s23 = smov [#allocation4]   ;;  %s1799_s27 = scalar_lea.hbm %s2382_s7, 2048 }
  0x13   :  { %s45_s24 = sshll.u32 %s1828_s23, 4  ;;  %p1800_p8 = scmp.ne.s32.totalorder %s2382_s7, %s1799_s27  ;;  %s46_s24 = int_to_ptr.vmem [resolvable:$true] %s45_s24 }
  0x14   :  { %p1803_p9 = scmp.lt.u32.totalorder %s1799_s27, %s2382_s7 }
  0x16   :  { %p1805_p10 = pnand %p1803_p9, %p1800_p8 }
  0x18   :  { %1808 = shalt.err (!%p1805_p10)
}
  0x19   :  { %s1809_s12 = scalar_lea.vmem %s46_s24, 2048  ;;  %p1814_p12 = scmp.lt.s32.totalorder %s46_s24, %s46_s24 }
  0x1a   :  { %p1810_p11 = scmp.ne.s32.totalorder %s46_s24, %s1809_s12  ;;  %p1815_p13 = scmp.lt.s32.totalorder %s1809_s12, %s1809_s12 }
  0x1c   :  { %p1816_p0 = por %p1815_p13, %p1814_p12 }
  0x1e   :  { %p1817_p1 = pnand %p1816_p0, %p1810_p11 }
  0x20   :  { %1820 = shalt.err (!%p1817_p1)
}
  0x21   :  { %51 = dma.hbm_to_vmem [thread:$0]  %s2382_s7, 2048, %s46_s24, [#allocation5], %s1826_s19, %s1826_s19, %s1827_s20  }
  0x22   :  { %1821 = dma.done.wait [#allocation3], 2048  }
  0x23   :  { %1822 = vsyncadd [#allocation3], 4294965248 }
  0x24   :  { %1823 = dma.done.wait [#allocation5], 2048  }
  0x25   :  { %1824 = vsyncadd [#allocation5], 4294965248  ;;  %v1829_v0 = vmov 1   ;;  %v62_v1 = vld [vmem:[%s2375_s0 + $0x10] sm:$0xff]  ;;  %v60_v2 = vld [vmem:[%s2375_s0] sm:$0xff]  ;;  %v1830_v9 = vmov 0  }
  0x26   :  { %1749 = vset.pattern.permute.xlu0 %v1829_v0  ;;  %1747 = vset.pattern.permute.xlu1 %v1829_v0  ;;  %v1916_v3 = vld [vmem:[%s2375_s0 + $0x30] sm:$0xff]  ;;  %v61_v4 = vld [vmem:[%s2375_s0 + $0x8] sm:$0xff]  ;;  %v63_v6 = vld [vmem:[%s2375_s0 + $0x18] sm:$0xff]  ;;  %vm1251_vm0 = vcmask 23552  }
  0x27   :  { %290 = vperm.xlu0 %1749, %v62_v1   ;;  %282 = vperm.xlu1 %1747, %v60_v2   ;;  %v1925_v5 = vld [vmem:[%s2375_s0 + $0x50] sm:$0xff]  ;;  %v493_v7 = vld [vmem:[%s2378_s3] sm:$0xff]  ;;  %v494_v8 = vld [vmem:[%s2378_s3 + $0x8] sm:$0xff] }
  0x28   :  { %v1629_v10 = vpack.c.bf16 %v494_v8, %v493_v7  ;;  %v495_v11 = vld [vmem:[%s2378_s3 + $0x10] sm:$0xff]  ;;  %v496_v12 = vld [vmem:[%s2378_s3 + $0x18] sm:$0xff]  ;;  %v497_v15 = vld [vmem:[%s2378_s3 + $0x20] sm:$0xff] }
  0x29   :  { %v1947_v13 = vld [vmem:[%s2375_s0 + $0x70] sm:$0xff]  ;;  %v1633_v14 = vpack.c.bf16 %v496_v12, %v495_v11  ;;  %v498_v16 = vld [vmem:[%s2378_s3 + $0x28] sm:$0xff]  ;;  %v500_v19 = vld [vmem:[%s2378_s3 + $0x38] sm:$0xff] }
  0x2a   :  { %1630 = vmatprep.subr.bf16.mxu0 %v1629_v10  ;;  %v1637_v17 = vpack.c.bf16 %v498_v16, %v497_v15  ;;  %v499_v18 = vld [vmem:[%s2378_s3 + $0x30] sm:$0xff]  ;;  %v64_v20 = vld [vmem:[%s2375_s0 + $0x20] sm:$0xff]  ;;  %v502_v23 = vld [vmem:[%s2378_s3 + $0x48] sm:$0xff] }
  0x2b   :  { %306 = vperm.xlu0 %1749, %v1916_v3   ;;  %286 = vperm.xlu1 %1747, %v61_v4   ;;  %v1641_v21 = vpack.c.bf16 %v500_v19, %v499_v18  ;;  %v501_v22 = vld [vmem:[%s2378_s3 + $0x40] sm:$0xff]  ;;  %v503_v25 = vld [vmem:[%s2378_s3 + $0x50] sm:$0xff]  ;;  %v504_v26 = vld [vmem:[%s2378_s3 + $0x58] sm:$0xff] }
  0x2c   :  { %1632 = vmatpush3.bf16.msra.mxu0 %v1629_v10  ;;  %v1645_v24 = vpack.c.bf16 %v502_v23, %v501_v22  ;;  %v1649_v27 = vpack.c.bf16 %v504_v26, %v503_v25  ;;  %v65_v28 = vld [vmem:[%s2375_s0 + $0x28] sm:$0xff]  ;;  %v505_v29 = vld [vmem:[%s2378_s3 + $0x60] sm:$0xff]  ;;  %v507_v32 = vld [vmem:[%s2378_s3 + $0x70] sm:$0xff] }
  0x2d   :  { %1634 = vmatprep.subr.bf16.mxu0 %v1633_v14  ;;  %v506_v30 = vld [vmem:[%s2378_s3 + $0x68] sm:$0xff]  ;;  %v508_v33 = vld [vmem:[%s2378_s3 + $0x78] sm:$0xff]  ;;  %v68_v37 = vld [vmem:[%s2375_s0 + $0x40] sm:$0xff] }
  0x2e   :  { %v1653_v31 = vpack.c.bf16 %v506_v30, %v505_v29  ;;  %v67_v34 = vld [vmem:[%s2375_s0 + $0x38] sm:$0xff]  ;;  %v1657_v35 = vpack.c.bf16 %v508_v33, %v507_v32  ;;  %v69_v36 = vld [vmem:[%s2375_s0 + $0x48] sm:$0xff]  ;;  %v78_v41 = vld [vmem:[%s2375_s0 + $0x90] sm:$0xff] }
  0x2f   :  { %322 = vperm.xlu0 %1749, %v1925_v5   ;;  %1748 = vset.pattern.permute.xlu1 %v1830_v9  ;;  %v73_v38 = vld [vmem:[%s2375_s0 + $0x68] sm:$0xff]  ;;  %v71_v40 = vld [vmem:[%s2375_s0 + $0x58] sm:$0xff]  ;;  %v82_v43 = vld [vmem:[%s2375_s0 + $0xb0] sm:$0xff] }
  0x30   :  { %105 = vperm.xlu1 %1748, %v63_v6   ;;  %1636 = vmatpush3.bf16.msra.mxu0 %v1633_v14  ;;  %v77_v39 = vld [vmem:[%s2375_s0 + $0x88] sm:$0xff]  ;;  %v72_v44 = vld [vmem:[%s2375_s0 + $0x60] sm:$0xff]  ;;  %v75_v46 = vld [vmem:[%s2375_s0 + $0x78] sm:$0xff] }
  0x31   :  { %1638 = vmatprep.subr.bf16.mxu0 %v1637_v17  ;;  %v81_v42 = vld [vmem:[%s2375_s0 + $0xa8] sm:$0xff]  ;;  %v76_v47 = vld [vmem:[%s2375_s0 + $0x80] sm:$0xff]  ;;  %v79_v48 = vld [vmem:[%s2375_s0 + $0x98] sm:$0xff] }
  0x32   :  { %v85_v45 = vld [vmem:[%s2375_s0 + $0xc8] sm:$0xff]  ;;  %v80_v49 = vld [vmem:[%s2375_s0 + $0xa0] sm:$0xff]  ;;  %v83_v50 = vld [vmem:[%s2375_s0 + $0xb8] sm:$0xff] }
  0x33   :  { %338 = vperm.xlu0 %1749, %v1947_v13   ;;  %v84_v57 = vld [vmem:[%s2375_s0 + $0xc0] sm:$0xff]  ;;  %v764_v29 = vld [vmem:[#allocation2 + $0x8] sm:$0xff]  ;;  %v765_v30 = vld [vmem:[#allocation2 + $0x10] sm:$0xff] }
  0x34   :  { %1750 = vset.pattern.permute.xlu1 %v1829_v0  ;;  %1640 = vmatpush3.bf16.msra.mxu0 %v1637_v17  ;;  %v2082_v60 = vld [vmem:[%s2376_s1 + $0x1] ss:$0 sm:$0xff]  ;;  %v2087_v61 = vld [vmem:[%s2376_s1] ss:$0 sm:$0xff] }
  0x35   :  { %294 = vperm.xlu1 %1750, %v63_v6   ;;  %1642 = vmatprep.subr.bf16.mxu0 %v1641_v21 }
  0x37   :  { %1762 = vset.pattern.permute.xlu0 %v1830_v9 }
  0x38   :  { %90 = vperm.xlu0 %1762, %v60_v2   ;;  %1644 = vmatpush3.bf16.msra.mxu0 %v1641_v21 }
  0x39   :  { %1751 = vset.pattern.permute.xlu1 %v1830_v9  ;;  %1646 = vmatprep.subr.bf16.mxu0 %v1645_v24 }
  0x3a   :  { %110 = vperm.xlu1 %1751, %v64_v20  }
  0x3c   :  { %95 = vperm.xlu0 %1762, %v61_v4   ;;  %1648 = vmatpush3.bf16.msra.mxu0 %v1645_v24 }
  0x3d   :  { %1650 = vmatprep.subr.bf16.mxu0 %v1649_v27 }
  0x3e   :  { %1752 = vset.pattern.permute.xlu1 %v1829_v0 }
  0x3f   :  { %298 = vperm.xlu1 %1752, %v64_v20  }
  0x40   :  { %100 = vperm.xlu0 %1762, %v62_v1   ;;  %1652 = vmatpush3.bf16.msra.mxu0 %v1649_v27  ;;  %v2093_v1 = vld [vmem:[%s2377_s2] ss:$0 sm:$0xff] }
  0x41   :  { %1654 = vmatprep.subr.bf16.mxu0 %v1653_v31 }
  0x43   :  { %302 = vperm.xlu1 %1752, %v65_v28  }
  0x44   :  { %115 = vperm.xlu0 %1762, %v65_v28   ;;  %1656 = vmatpush3.bf16.msra.mxu0 %v1653_v31  ;;  %v763_v28 = vld [vmem:[#allocation2] sm:$0xff] }
  0x45   :  { %1658 = vmatprep.subr.bf16.mxu0 %v1657_v35 }
  0x47   :  { %1753 = vset.pattern.permute.xlu1 %v1830_v9 }
  0x48   :  { %125 = vperm.xlu1 %1753, %v67_v34   ;;  %120 = vperm.xlu0 %1762, %v1916_v3  }
  0x49   :  { %1660 = vmatpush3.bf16.msra.mxu0 %v1657_v35  ;;  %v766_v35 = vld [vmem:[#allocation2 + $0x18] sm:$0xff] }
  0x4c   :  { %1754 = vset.pattern.permute.xlu1 %v1829_v0  ;;  %135 = vperm.xlu0 %1762, %v69_v36  }
  0x4d   :  { %310 = vperm.xlu1 %1754, %v67_v34   ;;  %v1661_v34 = vpack.c.bf16 %v764_v29, %v763_v28 }
  0x4f   :  { %1662 = vmatprep.subr.bf16.mxu1 %v1661_v34 }
  0x50   :  { %140 = vperm.xlu0 %1762, %v1925_v5   ;;  %1664 = vmatpush3.bf16.msra.mxu1 %v1661_v34 }
  0x51   :  { %1755 = vset.pattern.permute.xlu1 %v1830_v9 }
  0x52   :  { %130 = vperm.xlu1 %1755, %v68_v37  }
  0x54   :  { %155 = vperm.xlu0 %1762, %v73_v38  }
  0x56   :  { %1756 = vset.pattern.permute.xlu1 %v1829_v0 }
  0x57   :  { %314 = vperm.xlu1 %1756, %v68_v37   ;;  %v1665_v37 = vpack.c.bf16 %v766_v35, %v765_v30 }
  0x58   :  { %160 = vperm.xlu0 %1762, %v1947_v13  }
  0x59   :  { %1666 = vmatprep.subr.bf16.mxu1 %v1665_v37 }
  0x5a   :  { %1668 = vmatpush3.bf16.msra.mxu1 %v1665_v37 }
  0x5b   :  { %318 = vperm.xlu1 %1756, %v69_v36  }
  0x5c   :  { %175 = vperm.xlu0 %1762, %v77_v39  }
  0x5f   :  { %1757 = vset.pattern.permute.xlu1 %v1830_v9 }
  0x60   :  { %145 = vperm.xlu1 %1757, %v71_v40   ;;  %180 = vperm.xlu0 %1762, %v78_v41  }
  0x64   :  { %1758 = vset.pattern.permute.xlu1 %v1829_v0  ;;  %195 = vperm.xlu0 %1762, %v81_v42  }
  0x65   :  { %326 = vperm.xlu1 %1758, %v71_v40  }
  0x68   :  { %200 = vperm.xlu0 %1762, %v82_v43  }
  0x69   :  { %1759 = vset.pattern.permute.xlu1 %v1830_v9 }
  0x6a   :  { %150 = vperm.xlu1 %1759, %v72_v44  }
  0x6c   :  { %1770 = vset.pattern.permute.xlu0 %v1829_v0 }
  0x6d   :  { %354 = vperm.xlu0 %1770, %v78_v41  }
  0x6e   :  { %1760 = vset.pattern.permute.xlu1 %v1829_v0 }
  0x6f   :  { %330 = vperm.xlu1 %1760, %v72_v44  }
  0x71   :  { %370 = vperm.xlu0 %1770, %v82_v43  }
  0x73   :  { %334 = vperm.xlu1 %1760, %v73_v38   ;;  %v767_v38 = vld [vmem:[#allocation2 + $0x20] sm:$0xff] }
  0x75   :  { %1774 = vset.pattern.permute.xlu0 %v1830_v9 }
  0x76   :  { %215 = vperm.xlu0 %1774, %v85_v45  }
  0x77   :  { %1761 = vset.pattern.permute.xlu1 %v1830_v9 }
  0x78   :  { %165 = vperm.xlu1 %1761, %v75_v46  }
  0x7a   :  { %1776 = vset.pattern.permute.xlu0 %v1829_v0 }
  0x7c   :  { %1763 = vset.pattern.permute.xlu1 %v1829_v0 }
  0x7d   :  { %342 = vperm.xlu1 %1763, %v75_v46  }
  0x81   :  { %1764 = vset.pattern.permute.xlu1 %v1830_v9 }
  0x82   :  { %170 = vperm.xlu1 %1764, %v76_v47  }
  0x86   :  { %1765 = vset.pattern.permute.xlu1 %v1829_v0 }
  0x87   :  { %346 = vperm.xlu1 %1765, %v76_v47  }
  0x8b   :  { %350 = vperm.xlu1 %1765, %v77_v39   ;;  %v768_v39 = vld [vmem:[#allocation2 + $0x28] sm:$0xff] }
  0x8f   :  { %1766 = vset.pattern.permute.xlu1 %v1830_v9 }
  0x90   :  { %185 = vperm.xlu1 %1766, %v79_v48  }
  0x94   :  { %1767 = vset.pattern.permute.xlu1 %v1829_v0 }
  0x95   :  { %358 = vperm.xlu1 %1767, %v79_v48  }
  0x99   :  { %1768 = vset.pattern.permute.xlu1 %v1830_v9 }
  0x9a   :  { %190 = vperm.xlu1 %1768, %v80_v49  }
  0x9e   :  { %1769 = vset.pattern.permute.xlu1 %v1829_v0 }
  0x9f   :  { %362 = vperm.xlu1 %1769, %v80_v49  }
  0xa3   :  { %366 = vperm.xlu1 %1769, %v81_v42  }
  0xa6   :  { %v283_v51 = vpop.permute.xlu1 %282  ;;  %v291_v52 = vpop.permute.xlu0 %290 }
  0xa7   :  { %1771 = vset.pattern.permute.xlu1 %v1830_v9  ;;  %v389_v2 = vmul.f32 %v2082_v60, %v283_v51  ;;  %v391_v14 = vmul.f32 %v2082_v60, %v291_v52 }
  0xa8   :  { %205 = vperm.xlu1 %1771, %v83_v50  }
  0xaa   :  { %v287_v53 = vpop.permute.xlu1 %286  ;;  %v2067_v54 = vpop.permute.xlu0 %306 }
  0xab   :  { %v390_v10 = vmul.f32 %v2082_v60, %v287_v53  ;;  %v395_v44 = vmul.f32 %v2082_v60, %v2067_v54  ;;  %v769_v53 = vld [vmem:[#allocation2 + $0x30] sm:$0xff] }
  0xac   :  { %1772 = vset.pattern.permute.xlu1 %v1829_v0 }
  0xad   :  { %374 = vperm.xlu1 %1772, %v83_v50   ;;  %v1669_v50 = vpack.c.bf16 %v768_v39, %v767_v38 }
  0xae   :  { %v2070_v55 = vpop.permute.xlu0 %322 }
  0xaf   :  { %v106_v56 = vpop.permute.xlu1 %105  ;;  %1670 = vmatprep.subr.bf16.mxu1 %v1669_v50 }
  0xb0   :  { %v225_v4 = vmul.f32 %v2087_v61, %v106_v56  ;;  %v770_v56 = vld [vmem:[#allocation2 + $0x38] sm:$0xff]  ;;  %1672 = vmatpush3.bf16.msra.mxu1 %v1669_v50 }
  0xb1   :  { %1773 = vset.pattern.permute.xlu1 %v1830_v9 }
  0xb2   :  { %210 = vperm.xlu1 %1773, %v84_v57   ;;  %v2076_v58 = vpop.permute.xlu0 %338  ;;  %v257_v15 = vadd.f32 %v2093_v1, %v225_v4 }
  0xb4   :  { %v295_v59 = vpop.permute.xlu1 %294 }
  0xb5   :  { %v392_v9 = vmul.f32 %v2082_v60, %v295_v59 }
  0xb6   :  { %1775 = vset.pattern.permute.xlu1 %v1829_v0 }
  0xb7   :  { %v91_v62 = vpop.permute.xlu0 %90  ;;  %378 = vperm.xlu1 %1775, %v84_v57   ;;  %v418_v22 = vadd.f32 %v392_v9, %v257_v15 }
  0xb8   :  { %v222_v63 = vmul.f32 %v2087_v61, %v91_v62 }
  0xb9   :  { %v111_v0 = vpop.permute.xlu1 %110  ;;  %v444_v36 = vmul.f32 0.01, %v418_v22 }
  0xba   :  { %v254_v3 = vadd.f32 %v2093_v1, %v222_v63  ;;  %v226_v6 = vmul.f32 %v2087_v61, %v111_v0 }
  0xbb   :  { %v96_v5 = vpop.permute.xlu0 %95  ;;  %382 = vperm.xlu1 %1775, %v85_v45   ;;  %v470_v52 = vmax.f32 %v418_v22, %v444_v36 }
  0xbc   :  { %v223_v7 = vmul.f32 %v2087_v61, %v96_v5  ;;  %v415_v8 = vadd.f32 %v389_v2, %v254_v3  ;;  %v258_v18 = vadd.f32 %v2093_v1, %v226_v6  ;;  %v1673_v3 = vpack.c.bf16 %v770_v56, %v769_v53  ;;  %v771_v6 = vld [vmem:[#allocation2 + $0x40] sm:$0xff] }
  0xbd   :  { %v403_v53 = vmul.f32 %v2082_v60, %v2076_v58 }
  0xbe   :  { %v255_v11 = vadd.f32 %v2093_v1, %v223_v7  ;;  %v299_v12 = vpop.permute.xlu1 %298  ;;  %v441_v13 = vmul.f32 0.01, %v415_v8  ;;  %v772_v7 = vld [vmem:[#allocation2 + $0x48] sm:$0xff]  ;;  %1674 = vmatprep.subr.bf16.mxu1 %v1673_v3 }
  0xbf   :  { %v393_v16 = vmul.f32 %v2082_v60, %v299_v12  ;;  %v101_v17 = vpop.permute.xlu0 %100  ;;  %1676 = vmatpush3.bf16.msra.mxu1 %v1673_v3 }
  0xc0   :  { %v416_v19 = vadd.f32 %v390_v10, %v255_v11  ;;  %v224_v20 = vmul.f32 %v2087_v61, %v101_v17  ;;  %v467_v21 = vmax.f32 %v415_v8, %v441_v13  ;;  %v1677_v13 = vpack.c.bf16 %v772_v7, %v771_v6  ;;  %v774_v17 = vld [vmem:[#allocation2 + $0x58] sm:$0xff] }
  0xc1   :  { %v419_v23 = vadd.f32 %v393_v16, %v258_v18  ;;  %v773_v16 = vld [vmem:[#allocation2 + $0x50] sm:$0xff] }
  0xc2   :  { %v256_v24 = vadd.f32 %v2093_v1, %v224_v20  ;;  %1448 = vmatprep.mubr.f32.mxu0 %v467_v21  ;;  %v303_v25 = vpop.permute.xlu1 %302  ;;  %v442_v26 = vmul.f32 0.01, %v416_v19  ;;  %v399_v20 = vmul.f32 %v2082_v60, %v2070_v55  ;;  %1678 = vmatprep.subr.bf16.mxu1 %v1677_v13  ;;  %v1681_v22 = vpack.c.bf16 %v774_v17, %v773_v16 }
  0xc3   :  { %v116_v27 = vpop.permute.xlu0 %115  ;;  %v445_v40 = vmul.f32 0.01, %v419_v23  ;;  %v394_v41 = vmul.f32 %v2082_v60, %v303_v25  ;;  %1680 = vmatpush3.bf16.msra.mxu1 %v1677_v13 }
  0xc4   :  { %v417_v31 = vadd.f32 %v391_v14, %v256_v24  ;;  %v227_v32 = vmul.f32 %v2087_v61, %v116_v27  ;;  %v468_v33 = vmax.f32 %v416_v19, %v442_v26  ;;  %1682 = vmatprep.subr.bf16.mxu1 %v1681_v22 }
  0xc5   :  { %v471_v59 = vmax.f32 %v419_v23, %v445_v40 }
  0xc6   :  { %v259_v42 = vadd.f32 %v2093_v1, %v227_v32  ;;  %1449 = vmatmul.mubr.f32.vlgmr.msra.gmra.mrb[0].mxu0 %v468_v33  ;;  %v443_v43 = vmul.f32 0.01, %v417_v31 }
  0xc7   :  { %v126_v45 = vpop.permute.xlu1 %125  ;;  %v121_v46 = vpop.permute.xlu0 %120  ;;  %1684 = vmatpush3.bf16.msra.mxu1 %v1681_v22 }
  0xc8   :  { %v420_v47 = vadd.f32 %v394_v41, %v259_v42  ;;  %v228_v48 = vmul.f32 %v2087_v61, %v121_v46  ;;  %v469_v49 = vmax.f32 %v417_v31, %v443_v43  ;;  %v229_v51 = vmul.f32 %v2087_v61, %v126_v45 }
  0xca   :  { %v260_v57 = vadd.f32 %v2093_v1, %v228_v48  ;;  %1451 = vmatprep.mubr.f32.mxu0 %v469_v49  ;;  %v446_v62 = vmul.f32 0.01, %v420_v47  ;;  %v261_v4 = vadd.f32 %v2093_v1, %v229_v51 }
  0xcb   :  { %1452 = vmatmul.mubr.f32.gmra.mrb[2].mxu0 %v470_v52  ;;  %v136_v54 = vpop.permute.xlu0 %135 }
  0xcc   :  { %v421_v63 = vadd.f32 %v395_v44, %v260_v57  ;;  %1454 = vmatprep.mubr.f32.mxu0 %v471_v59  ;;  %v311_v0 = vpop.permute.xlu1 %310  ;;  %v472_v2 = vmax.f32 %v420_v47, %v446_v62  ;;  %v231_v23 = vmul.f32 %v2087_v61, %v136_v54 }
  0xcd   :  { %v396_v5 = vmul.f32 %v2082_v60, %v311_v0 }
  0xce   :  { %v447_v8 = vmul.f32 0.01, %v421_v63  ;;  %v263_v28 = vadd.f32 %v2093_v1, %v231_v23 }
  0xcf   :  { %v422_v9 = vadd.f32 %v396_v5, %v261_v4  ;;  %1455 = vmatmul.mubr.f32.gmra.mrb[4].mxu0 %v472_v2  ;;  %v141_v10 = vpop.permute.xlu0 %140 }
  0xd0   :  { %v473_v11 = vmax.f32 %v421_v63, %v447_v8  ;;  %v232_v12 = vmul.f32 %v2087_v61, %v141_v10 }
  0xd1   :  { %v448_v14 = vmul.f32 0.01, %v422_v9  ;;  %v131_v15 = vpop.permute.xlu1 %130 }
  0xd2   :  { %1457 = vmatprep.mubr.f32.mxu0 %v473_v11  ;;  %v230_v18 = vmul.f32 %v2087_v61, %v131_v15  ;;  %v264_v21 = vadd.f32 %v2093_v1, %v232_v12 }
  0xd3   :  { %v474_v19 = vmax.f32 %v422_v9, %v448_v14  ;;  %v156_v38 = vpop.permute.xlu0 %155 }
  0xd4   :  { %v262_v25 = vadd.f32 %v2093_v1, %v230_v18  ;;  %v425_v27 = vadd.f32 %v399_v20, %v264_v21  ;;  %v235_v51 = vmul.f32 %v2087_v61, %v156_v38 }
  0xd5   :  { %1458 = vmatmul.mubr.f32.gmra.mrb[6].mxu0 %v474_v19 }
  0xd6   :  { %v315_v24 = vpop.permute.xlu1 %314  ;;  %v451_v32 = vmul.f32 0.01, %v425_v27  ;;  %v267_v54 = vadd.f32 %v2093_v1, %v235_v51 }
  0xd7   :  { %v397_v26 = vmul.f32 %v2082_v60, %v315_v24  ;;  %v161_v44 = vpop.permute.xlu0 %160 }
  0xd8   :  { %v477_v37 = vmax.f32 %v425_v27, %v451_v32  ;;  %v236_v48 = vmul.f32 %v2087_v61, %v161_v44 }
  0xd9   :  { %v423_v29 = vadd.f32 %v397_v26, %v262_v25 }
  0xda   :  { %v319_v30 = vpop.permute.xlu1 %318  ;;  %v268_v56 = vadd.f32 %v2093_v1, %v236_v48  ;;  %v775_v48 = vld [vmem:[#allocation2 + $0x60] sm:$0xff] }
  0xdb   :  { %v449_v55 = vmul.f32 0.01, %v423_v29  ;;  %v398_v31 = vmul.f32 %v2082_v60, %v319_v30  ;;  %v176_v52 = vpop.permute.xlu0 %175 }
  0xdc   :  { %v429_v0 = vadd.f32 %v403_v53, %v268_v56 }
  0xdd   :  { %v424_v33 = vadd.f32 %v398_v31, %v263_v28  ;;  %v475_v34 = vmax.f32 %v423_v29, %v449_v55  ;;  %v239_v28 = vmul.f32 %v2087_v61, %v176_v52 }
  0xde   :  { %v455_v8 = vmul.f32 0.01, %v429_v0 }
  0xdf   :  { %v450_v35 = vmul.f32 0.01, %v424_v33  ;;  %1460 = vmatprep.mubr.f32.mxu0 %v475_v34  ;;  %v146_v36 = vpop.permute.xlu1 %145  ;;  %v181_v3 = vpop.permute.xlu0 %180 }
  0xe0   :  { %v233_v39 = vmul.f32 %v2087_v61, %v146_v36  ;;  %v481_v13 = vmax.f32 %v429_v0, %v455_v8  ;;  %v240_v21 = vmul.f32 %v2087_v61, %v181_v3 }
  0xe1   :  { %v476_v40 = vmax.f32 %v424_v33, %v450_v35  ;;  %v271_v33 = vadd.f32 %v2093_v1, %v239_v28 }
  0xe2   :  { %v265_v42 = vadd.f32 %v2093_v1, %v233_v39  ;;  %v272_v25 = vadd.f32 %v2093_v1, %v240_v21 }
  0xe3   :  { %1461 = vmatmul.mubr.f32.gmra.mrb[8].mxu0 %v476_v40  ;;  %v2142_v10 = vpop.permute.xlu0 %195 }
  0xe4   :  { %v327_v41 = vpop.permute.xlu1 %326  ;;  %1463 = vmatprep.mubr.f32.mxu0 %v477_v37 }
  0xe5   :  { %v400_v43 = vmul.f32 %v2082_v60, %v327_v41 }
  0xe7   :  { %v426_v45 = vadd.f32 %v400_v43, %v265_v42  ;;  %v201_v17 = vpop.permute.xlu0 %200 }
  0xe8   :  { %v244_v53 = vmul.f32 %v2087_v61, %v201_v17 }
  0xe9   :  { %v452_v46 = vmul.f32 0.01, %v426_v45  ;;  %v151_v47 = vpop.permute.xlu1 %150 }
  0xea   :  { %v234_v49 = vmul.f32 %v2087_v61, %v151_v47  ;;  %v276_v0 = vadd.f32 %v2093_v1, %v244_v53 }
  0xeb   :  { %v478_v50 = vmax.f32 %v426_v45, %v452_v46 }
  0xec   :  { %v266_v59 = vadd.f32 %v2093_v1, %v234_v49  ;;  %v355_v24 = vpop.permute.xlu0 %354  ;;  %v776_v49 = vld [vmem:[#allocation2 + $0x68] sm:$0xff] }
  0xed   :  { %1464 = vmatmul.mubr.f32.gmra.mrb[10].mxu0 %v478_v50  ;;  %v407_v26 = vmul.f32 %v2082_v60, %v355_v24  ;;  %v1685_v50 = vpack.c.bf16 %v776_v49, %v775_v48  ;;  %v1033_v49 = vld [vmem:[#allocation4] sm:$0xff] }
  0xee   :  { %v331_v57 = vpop.permute.xlu1 %330 }
  0xef   :  { %v401_v62 = vmul.f32 %v2082_v60, %v331_v57  ;;  %v433_v31 = vadd.f32 %v407_v26, %v272_v25  ;;  %1686 = vmatprep.subr.bf16.mxu1 %v1685_v50 }
  0xf0   :  { %v371_v56 = vpop.permute.xlu0 %370  ;;  %1688 = vmatpush3.bf16.msra.mxu1 %v1685_v50  ;;  %v1034_v50 = vld [vmem:[#allocation4 + $0x8] sm:$0xff] }
  0xf1   :  { %v427_v63 = vadd.f32 %v401_v62, %v266_v59  ;;  %v459_v38 = vmul.f32 0.01, %v433_v31  ;;  %v777_v62 = vld [vmem:[#allocation2 + $0x70] sm:$0xff] }
  0xf2   :  { %v335_v2 = vpop.permute.xlu1 %334 }
  0xf3   :  { %v453_v4 = vmul.f32 0.01, %v427_v63  ;;  %v402_v5 = vmul.f32 %v2082_v60, %v335_v2  ;;  %v485_v43 = vmax.f32 %v433_v31, %v459_v38  ;;  %v411_v2 = vmul.f32 %v2082_v60, %v371_v56 }
  0xf4   :  { %v1693_v56 = vpack.c.bf16 %v1034_v50, %v1033_v49 }
  0xf5   :  { %v428_v6 = vadd.f32 %v402_v5, %v267_v54  ;;  %v479_v7 = vmax.f32 %v427_v63, %v453_v4  ;;  %v778_v54 = vld [vmem:[#allocation2 + $0x78] sm:$0xff]  ;;  %v243_v4 = vmul.f32 %v2087_v61, %v2142_v10  ;;  %v437_v8 = vadd.f32 %v411_v2, %v276_v0  ;;  %v216_v26 = vpop.permute.xlu0 %215 }
  0xf6   :  { %v1689_v63 = vpack.c.bf16 %v778_v54, %v777_v62  ;;  %v1037_v54 = vld [vmem:[#allocation4 + $0x20] sm:$0xff]  ;;  %1694 = vmatprep.subr.bf16.mxu0 %v1693_v56 }
  0xf7   :  { %v454_v58 = vmul.f32 0.01, %v428_v6  ;;  %1466 = vmatprep.mubr.f32.mxu0 %v479_v7  ;;  %v166_v9 = vpop.permute.xlu1 %165  ;;  %1696 = vmatpush3.bf16.msra.mxu0 %v1693_v56 }
  0xf8   :  { %v237_v11 = vmul.f32 %v2087_v61, %v166_v9  ;;  %1690 = vmatprep.subr.bf16.mxu1 %v1689_v63  ;;  %v275_v9 = vadd.f32 %v2093_v1, %v243_v4 }
  0xf9   :  { %v480_v12 = vmax.f32 %v428_v6, %v454_v58  ;;  %1692 = vmatpush3.bf16.msra.mxu1 %v1689_v63  ;;  %v1038_v63 = vld [vmem:[#allocation4 + $0x28] sm:$0xff] }
  0xfa   :  { %v269_v15 = vadd.f32 %v2093_v1, %v237_v11  ;;  %1725 = vmatprep.subr.bf16.mxu1 %v1693_v56 }
  0xfb   :  { %1467 = vmatmul.mubr.f32.gmra.mrb[12].mxu0 %v480_v12 }
  0xfc   :  { %1469 = vmatprep.mubr.f32.mxu0 %v481_v13  ;;  %v343_v14 = vpop.permute.xlu1 %342 }
  0xfd   :  { %v404_v16 = vmul.f32 %v2082_v60, %v343_v14 }
  0xff   :  { %v430_v18 = vadd.f32 %v404_v16, %v269_v15  ;;  %v463_v15 = vmul.f32 0.01, %v437_v8 }
 0x101   :  { %v456_v19 = vmul.f32 0.01, %v430_v18  ;;  %v171_v20 = vpop.permute.xlu1 %170 }
 0x102   :  { %v238_v22 = vmul.f32 %v2087_v61, %v171_v20 }
 0x103   :  { %v482_v23 = vmax.f32 %v430_v18, %v456_v19  ;;  %v489_v19 = vmax.f32 %v437_v8, %v463_v15 }
 0x104   :  { %v270_v29 = vadd.f32 %v2093_v1, %v238_v22 }
 0x105   :  { %1470 = vmatmul.mubr.f32.gmra.mrb[14].mxu0 %v482_v23 }
 0x106   :  { %v347_v27 = vpop.permute.xlu1 %346 }
 0x107   :  { %v405_v30 = vmul.f32 %v2082_v60, %v347_v27 }
 0x109   :  { %v431_v55 = vadd.f32 %v405_v30, %v270_v29  ;;  %v247_v29 = vmul.f32 %v2087_v61, %v216_v26 }
 0x10a   :  { %v351_v32 = vpop.permute.xlu1 %350 }
 0x10b   :  { %v457_v34 = vmul.f32 0.01, %v431_v55  ;;  %v406_v35 = vmul.f32 %v2082_v60, %v351_v32 }
 0x10d   :  { %v432_v36 = vadd.f32 %v406_v35, %v271_v33  ;;  %v483_v37 = vmax.f32 %v431_v55, %v457_v34  ;;  %v279_v33 = vadd.f32 %v2093_v1, %v247_v29 }
 0x10f   :  { %v458_v39 = vmul.f32 0.01, %v432_v36  ;;  %1472 = vmatprep.mubr.f32.mxu0 %v483_v37  ;;  %v186_v40 = vpop.permute.xlu1 %185 }
 0x110   :  { %v241_v41 = vmul.f32 %v2087_v61, %v186_v40 }
 0x111   :  { %v484_v42 = vmax.f32 %v432_v36, %v458_v39 }
 0x112   :  { %v273_v45 = vadd.f32 %v2093_v1, %v241_v41 }
 0x113   :  { %1473 = vmatmul.mubr.f32.gmra.mrb[16].mxu0 %v484_v42 }
 0x114   :  { %1475 = vmatprep.mubr.f32.mxu0 %v485_v43  ;;  %v359_v44 = vpop.permute.xlu1 %358 }
 0x115   :  { %v408_v46 = vmul.f32 %v2082_v60, %v359_v44 }
 0x117   :  { %v434_v47 = vadd.f32 %v408_v46, %v273_v45 }
 0x119   :  { %v460_v51 = vmul.f32 0.01, %v434_v47  ;;  %v191_v52 = vpop.permute.xlu1 %190 }
 0x11a   :  { %v242_v57 = vmul.f32 %v2087_v61, %v191_v52 }
 0x11b   :  { %v486_v59 = vmax.f32 %v434_v47, %v460_v51  ;;  %v1035_v51 = vld [vmem:[#allocation4 + $0x10] sm:$0xff] }
 0x11c   :  { %v274_v5 = vadd.f32 %v2093_v1, %v242_v57  ;;  %v1036_v57 = vld [vmem:[#allocation4 + $0x18] sm:$0xff] }
 0x11d   :  { %1476 = vmatmul.mubr.f32.gmra.mrb[18].mxu0 %v486_v59  ;;  %v1697_v62 = vpack.c.bf16 %v1036_v57, %v1035_v51 }
 0x11e   :  { %v363_v3 = vpop.permute.xlu1 %362 }
 0x11f   :  { %v409_v6 = vmul.f32 %v2082_v60, %v363_v3  ;;  %1698 = vmatprep.subr.bf16.mxu0 %v1697_v62 }
 0x120   :  { %1700 = vmatpush3.bf16.msra.mxu0 %v1697_v62 }
 0x121   :  { %v435_v7 = vadd.f32 %v409_v6, %v274_v5 }
 0x122   :  { %v367_v58 = vpop.permute.xlu1 %366 }
 0x123   :  { %v461_v11 = vmul.f32 0.01, %v435_v7  ;;  %v410_v12 = vmul.f32 %v2082_v60, %v367_v58 }
 0x125   :  { %v436_v13 = vadd.f32 %v410_v12, %v275_v9  ;;  %v487_v14 = vmax.f32 %v435_v7, %v461_v11  ;;  %v1701_v7 = vpack.c.bf16 %v1038_v63, %v1037_v54  ;;  %v1039_v9 = vld [vmem:[#allocation4 + $0x30] sm:$0xff]  ;;  %v1040_v11 = vld [vmem:[#allocation4 + $0x38] sm:$0xff] }
 0x126   :  { %v1705_v15 = vpack.c.bf16 %v1040_v11, %v1039_v9 }
 0x127   :  { %v462_v16 = vmul.f32 0.01, %v436_v13  ;;  %1478 = vmatprep.mubr.f32.mxu0 %v487_v14  ;;  %v206_v17 = vpop.permute.xlu1 %205  ;;  %1702 = vmatprep.subr.bf16.mxu0 %v1701_v7 }
 0x128   :  { %v245_v10 = vmul.f32 %v2087_v61, %v206_v17  ;;  %1704 = vmatpush3.bf16.msra.mxu0 %v1701_v7 }
 0x129   :  { %v488_v18 = vmax.f32 %v436_v13, %v462_v16  ;;  %1706 = vmatprep.subr.bf16.mxu0 %v1705_v15 }
 0x12a   :  { %v277_v21 = vadd.f32 %v2093_v1, %v245_v10 }
 0x12b   :  { %1479 = vmatmul.mubr.f32.gmra.mrb[20].mxu0 %v488_v18  ;;  %v1041_v18 = vld [vmem:[#allocation4 + $0x40] sm:$0xff] }
 0x12c   :  { %1481 = vmatprep.mubr.f32.mxu0 %v489_v19  ;;  %v375_v20 = vpop.permute.xlu1 %374  ;;  %v1042_v19 = vld [vmem:[#allocation4 + $0x48] sm:$0xff]  ;;  %1708 = vmatpush3.bf16.msra.mxu0 %v1705_v15 }
 0x12d   :  { %v412_v22 = vmul.f32 %v2082_v60, %v375_v20 }
 0x12f   :  { %v438_v23 = vadd.f32 %v412_v22, %v277_v21 }
 0x131   :  { %v464_v24 = vmul.f32 0.01, %v438_v23  ;;  %v211_v25 = vpop.permute.xlu1 %210 }
 0x132   :  { %v246_v27 = vmul.f32 %v2087_v61, %v211_v25  ;;  %v2181_v61 = vld [vmem:[%s2379_s4] ss:$0 sm:$0xff]  ;;  %v1044_v25 = vld [vmem:[#allocation4 + $0x58] sm:$0xff] }
 0x133   :  { %v490_v28 = vmax.f32 %v438_v23, %v464_v24  ;;  %v1709_v23 = vpack.c.bf16 %v1042_v19, %v1041_v18  ;;  %v1043_v24 = vld [vmem:[#allocation4 + $0x50] sm:$0xff]  ;;  %v1048_v18 = vld [vmem:[#allocation4 + $0x78] sm:$0xff] }
 0x134   :  { %v278_v55 = vadd.f32 %v2093_v1, %v246_v27 }
 0x135   :  { %1482 = vmatmul.mubr.f32.gmra.mrb[22].mxu0 %v490_v28  ;;  %1710 = vmatprep.subr.bf16.mxu0 %v1709_v23  ;;  %v1713_v28 = vpack.c.bf16 %v1044_v25, %v1043_v24 }
 0x136   :  { %v379_v30 = vpop.permute.xlu1 %378  ;;  %1712 = vmatpush3.bf16.msra.mxu0 %v1709_v23 }
 0x137   :  { %v413_v31 = vmul.f32 %v2082_v60, %v379_v30  ;;  %1714 = vmatprep.subr.bf16.mxu0 %v1713_v28 }
 0x139   :  { %v439_v32 = vadd.f32 %v413_v31, %v278_v55 }
 0x13a   :  { %v383_v34 = vpop.permute.xlu1 %382  ;;  %1716 = vmatpush3.bf16.msra.mxu0 %v1713_v28 }
 0x13b   :  { %v465_v35 = vmul.f32 0.01, %v439_v32  ;;  %v414_v36 = vmul.f32 %v2082_v60, %v383_v34 }
 0x13d   :  { %v440_v37 = vadd.f32 %v414_v36, %v279_v33  ;;  %v491_v38 = vmax.f32 %v439_v32, %v465_v35 }
 0x13f   :  { %v466_v39 = vmul.f32 0.01, %v440_v37  ;;  %1484 = vmatprep.mubr.f32.mxu0 %v491_v38 }
 0x141   :  { %v492_v40 = vmax.f32 %v440_v37, %v466_v39 }
 0x143   :  { %1485 = vmatmul.mubr.f32.gmra.mrb[24].mxu0 %v492_v40 }
 0x199   :  { %v1450_v41 = vpop.f32.mrb[0].mxu0 }
 0x19a   :  { %v588_v42 = vadd.f32 %v1450_v41, %v2181_v61  ;;  %v582_v43 = vpop.f32.mrb[1].mxu0 }
 0x19b   :  { %v583_v1 = vadd.f32 %v2181_v61, %v582_v43 }
 0x19c   :  { %v712_v44 = vmul.f32 0.01, %v588_v42 }
 0x19d   :  { %v711_v45 = vmul.f32 0.01, %v583_v1 }
 0x19e   :  { %v1453_v60 = vpop.f32.mrb[2].mxu0  ;;  %v738_v52 = vmax.f32 %v588_v42, %v712_v44 }
 0x19f   :  { %v598_v46 = vadd.f32 %v1453_v60, %v2181_v61  ;;  %v592_v47 = vpop.f32.mrb[3].mxu0  ;;  %v737_v48 = vmax.f32 %v583_v1, %v711_v45 }
 0x1a0   :  { %v593_v53 = vadd.f32 %v2181_v61, %v592_v47 }
 0x1a1   :  { %v714_v59 = vmul.f32 0.01, %v598_v46  ;;  %1519 = vmatprep.mubr.f32.mxu1 %v737_v48 }
 0x1a2   :  { %v713_v0 = vmul.f32 0.01, %v593_v53  ;;  %v1456_v2 = vpop.f32.mrb[4].mxu0  ;;  %1520 = vmatmul.mubr.f32.vlgmr.msra.gmra.mrb[0].mxu1 %v738_v52 }
 0x1a3   :  { %v608_v3 = vadd.f32 %v1456_v2, %v2181_v61  ;;  %v602_v4 = vpop.f32.mrb[5].mxu0  ;;  %v740_v8 = vmax.f32 %v598_v46, %v714_v59  ;;  %1733 = vmatpush3.bf16.msra.mxu1 %v1693_v56 }
 0x1a4   :  { %v739_v5 = vmax.f32 %v593_v53, %v713_v0  ;;  %v603_v6 = vadd.f32 %v2181_v61, %v602_v4  ;;  %1726 = vmatprep.subr.bf16.mxu1 %v1697_v62 }
 0x1a5   :  { %v716_v58 = vmul.f32 0.01, %v608_v3 }
 0x1a6   :  { %v715_v12 = vmul.f32 0.01, %v603_v6  ;;  %1522 = vmatprep.mubr.f32.mxu1 %v739_v5 }
 0x1a7   :  { %1523 = vmatmul.mubr.f32.gmra.mrb[2].mxu1 %v740_v8  ;;  %v742_v16 = vmax.f32 %v608_v3, %v716_v58 }
 0x1a8   :  { %v741_v13 = vmax.f32 %v603_v6, %v715_v12  ;;  %v1459_v14 = vpop.f32.mrb[6].mxu0  ;;  %1734 = vmatpush3.bf16.msra.mxu1 %v1697_v62  ;;  %v1045_v12 = vld [vmem:[#allocation4 + $0x60] sm:$0xff] }
 0x1a9   :  { %v618_v17 = vadd.f32 %v1459_v14, %v2181_v61  ;;  %v612_v10 = vpop.f32.mrb[7].mxu0  ;;  %1727 = vmatprep.subr.bf16.mxu1 %v1701_v7 }
 0x1aa   :  { %v613_v20 = vadd.f32 %v2181_v61, %v612_v10  ;;  %1525 = vmatprep.mubr.f32.mxu1 %v741_v13  ;;  %v1046_v13 = vld [vmem:[#allocation4 + $0x68] sm:$0xff]  ;;  %v1047_v10 = vld [vmem:[#allocation4 + $0x70] sm:$0xff] }
 0x1ab   :  { %v718_v21 = vmul.f32 0.01, %v618_v17  ;;  %1526 = vmatmul.mubr.f32.gmra.mrb[4].mxu1 %v742_v16  ;;  %v1721_v19 = vpack.c.bf16 %v1048_v18, %v1047_v10 }
 0x1ac   :  { %v717_v22 = vmul.f32 0.01, %v613_v20  ;;  %1735 = vmatpush3.bf16.msra.mxu1 %v1701_v7 }
 0x1ad   :  { %1728 = vmatprep.subr.bf16.mxu1 %v1705_v15  ;;  %v744_v27 = vmax.f32 %v618_v17, %v718_v21 }
 0x1ae   :  { %v743_v26 = vmax.f32 %v613_v20, %v717_v22 }
 0x1b0   :  { %1528 = vmatprep.mubr.f32.mxu1 %v743_v26  ;;  %1736 = vmatpush3.bf16.msra.mxu1 %v1705_v15  ;;  %v1717_v15 = vpack.c.bf16 %v1046_v13, %v1045_v12 }
 0x1b1   :  { %1529 = vmatmul.mubr.f32.gmra.mrb[6].mxu1 %v744_v27  ;;  %1729 = vmatprep.subr.bf16.mxu1 %v1709_v23 }
 0x1b2   :  { %1718 = vmatprep.subr.bf16.mxu0 %v1717_v15 }
 0x1b3   :  { %1720 = vmatpush3.bf16.msra.mxu0 %v1717_v15 }
 0x1b4   :  { %1737 = vmatpush3.bf16.msra.mxu1 %v1709_v23  ;;  %1722 = vmatprep.subr.bf16.mxu0 %v1721_v19 }
 0x1b5   :  { %1730 = vmatprep.subr.bf16.mxu1 %v1713_v28 }
 0x1b6   :  { %v1462_v29 = vpop.f32.mrb[8].mxu0 }
 0x1b7   :  { %v628_v30 = vadd.f32 %v1462_v29, %v2181_v61  ;;  %v622_v55 = vpop.f32.mrb[9].mxu0  ;;  %1724 = vmatpush3.bf16.msra.mxu0 %v1721_v19 }
 0x1b8   :  { %v623_v31 = vadd.f32 %v2181_v61, %v622_v55  ;;  %1738 = vmatpush3.bf16.msra.mxu1 %v1713_v28 }
 0x1b9   :  { %v720_v32 = vmul.f32 0.01, %v628_v30  ;;  %1731 = vmatprep.subr.bf16.mxu1 %v1717_v15 }
 0x1ba   :  { %v719_v33 = vmul.f32 0.01, %v623_v31 }
 0x1bb   :  { %v746_v35 = vmax.f32 %v628_v30, %v720_v32 }
 0x1bc   :  { %v745_v34 = vmax.f32 %v623_v31, %v719_v33  ;;  %1739 = vmatpush3.bf16.msra.mxu1 %v1717_v15 }
 0x1bd   :  { %1732 = vmatprep.subr.bf16.mxu1 %v1721_v19 }
 0x1be   :  { %1531 = vmatprep.mubr.f32.mxu1 %v745_v34 }
 0x1bf   :  { %1532 = vmatmul.mubr.f32.gmra.mrb[8].mxu1 %v746_v35 }
 0x1c0   :  { %v1465_v36 = vpop.f32.mrb[10].mxu0  ;;  %1740 = vmatpush3.bf16.msra.mxu1 %v1721_v19 }
 0x1c1   :  { %v638_v37 = vadd.f32 %v1465_v36, %v2181_v61  ;;  %v632_v38 = vpop.f32.mrb[11].mxu0 }
 0x1c2   :  { %v633_v39 = vadd.f32 %v2181_v61, %v632_v38 }
 0x1c3   :  { %v722_v40 = vmul.f32 0.01, %v638_v37 }
 0x1c4   :  { %v721_v41 = vmul.f32 0.01, %v633_v39 }
 0x1c5   :  { %v748_v43 = vmax.f32 %v638_v37, %v722_v40 }
 0x1c6   :  { %v747_v42 = vmax.f32 %v633_v39, %v721_v41 }
 0x1c8   :  { %1534 = vmatprep.mubr.f32.mxu1 %v747_v42 }
 0x1c9   :  { %1535 = vmatmul.mubr.f32.gmra.mrb[10].mxu1 %v748_v43  ;;  %v2212_v43 = vld [vmem:[%s2381_s6] ss:$0 sm:$0xff] }
 0x1ce   :  { %v1468_v1 = vpop.f32.mrb[12].mxu0 }
 0x1cf   :  { %v648_v44 = vadd.f32 %v1468_v1, %v2181_v61  ;;  %v642_v45 = vpop.f32.mrb[13].mxu0 }
 0x1d0   :  { %v643_v60 = vadd.f32 %v2181_v61, %v642_v45 }
 0x1d1   :  { %v724_v46 = vmul.f32 0.01, %v648_v44 }
 0x1d2   :  { %v723_v47 = vmul.f32 0.01, %v643_v60 }
 0x1d3   :  { %v750_v49 = vmax.f32 %v648_v44, %v724_v46 }
 0x1d4   :  { %v749_v48 = vmax.f32 %v643_v60, %v723_v47 }
 0x1d6   :  { %1537 = vmatprep.mubr.f32.mxu1 %v749_v48 }
 0x1d7   :  { %1538 = vmatmul.mubr.f32.gmra.mrb[12].mxu1 %v750_v49 }
 0x1d8   :  { %v1471_v50 = vpop.f32.mrb[14].mxu0 }
 0x1d9   :  { %v658_v51 = vadd.f32 %v1471_v50, %v2181_v61  ;;  %v652_v52 = vpop.f32.mrb[15].mxu0 }
 0x1da   :  { %v653_v53 = vadd.f32 %v2181_v61, %v652_v52 }
 0x1db   :  { %v726_v56 = vmul.f32 0.01, %v658_v51 }
 0x1dc   :  { %v725_v57 = vmul.f32 0.01, %v653_v53 }
 0x1dd   :  { %v752_v62 = vmax.f32 %v658_v51, %v726_v56 }
 0x1de   :  { %v751_v59 = vmax.f32 %v653_v53, %v725_v57 }
 0x1e0   :  { %1540 = vmatprep.mubr.f32.mxu1 %v751_v59 }
 0x1e1   :  { %1541 = vmatmul.mubr.f32.gmra.mrb[14].mxu1 %v752_v62 }
 0x1e6   :  { %v1474_v54 = vpop.f32.mrb[16].mxu0 }
 0x1e7   :  { %v668_v63 = vadd.f32 %v1474_v54, %v2181_v61  ;;  %v662_v0 = vpop.f32.mrb[17].mxu0 }
 0x1e8   :  { %v663_v2 = vadd.f32 %v2181_v61, %v662_v0 }
 0x1e9   :  { %v728_v3 = vmul.f32 0.01, %v668_v63 }
 0x1ea   :  { %v727_v4 = vmul.f32 0.01, %v663_v2 }
 0x1eb   :  { %v754_v6 = vmax.f32 %v668_v63, %v728_v3 }
 0x1ec   :  { %v753_v5 = vmax.f32 %v663_v2, %v727_v4 }
 0x1ee   :  { %1543 = vmatprep.mubr.f32.mxu1 %v753_v5 }
 0x1ef   :  { %1544 = vmatmul.mubr.f32.gmra.mrb[16].mxu1 %v754_v6 }
 0x1f0   :  { %v1477_v7 = vpop.f32.mrb[18].mxu0 }
 0x1f1   :  { %v678_v8 = vadd.f32 %v1477_v7, %v2181_v61  ;;  %v672_v58 = vpop.f32.mrb[19].mxu0 }
 0x1f2   :  { %v673_v9 = vadd.f32 %v2181_v61, %v672_v58 }
 0x1f3   :  { %v730_v11 = vmul.f32 0.01, %v678_v8 }
 0x1f4   :  { %v729_v14 = vmul.f32 0.01, %v673_v9 }
 0x1f5   :  { %v756_v17 = vmax.f32 %v678_v8, %v730_v11 }
 0x1f6   :  { %v755_v16 = vmax.f32 %v673_v9, %v729_v14 }
 0x1f8   :  { %1546 = vmatprep.mubr.f32.mxu1 %v755_v16 }
 0x1f9   :  { %1547 = vmatmul.mubr.f32.gmra.mrb[18].mxu1 %v756_v17 }
 0x1fe   :  { %v1480_v20 = vpop.f32.mrb[20].mxu0 }
 0x1ff   :  { %v688_v21 = vadd.f32 %v1480_v20, %v2181_v61  ;;  %v682_v22 = vpop.f32.mrb[21].mxu0 }
 0x200   :  { %v683_v23 = vadd.f32 %v2181_v61, %v682_v22 }
 0x201   :  { %v732_v24 = vmul.f32 0.01, %v688_v21 }
 0x202   :  { %v731_v25 = vmul.f32 0.01, %v683_v23 }
 0x203   :  { %v758_v27 = vmax.f32 %v688_v21, %v732_v24 }
 0x204   :  { %v757_v26 = vmax.f32 %v683_v23, %v731_v25 }
 0x206   :  { %1549 = vmatprep.mubr.f32.mxu1 %v757_v26 }
 0x207   :  { %1550 = vmatmul.mubr.f32.gmra.mrb[20].mxu1 %v758_v27 }
 0x208   :  { %v1483_v28 = vpop.f32.mrb[22].mxu0 }
 0x209   :  { %v698_v29 = vadd.f32 %v1483_v28, %v2181_v61  ;;  %v692_v30 = vpop.f32.mrb[23].mxu0 }
 0x20a   :  { %v693_v55 = vadd.f32 %v2181_v61, %v692_v30 }
 0x20b   :  { %v734_v31 = vmul.f32 0.01, %v698_v29 }
 0x20c   :  { %v733_v32 = vmul.f32 0.01, %v693_v55 }
 0x20d   :  { %v760_v34 = vmax.f32 %v698_v29, %v734_v31 }
 0x20e   :  { %v759_v33 = vmax.f32 %v693_v55, %v733_v32 }
 0x210   :  { %1552 = vmatprep.mubr.f32.mxu1 %v759_v33 }
 0x211   :  { %1553 = vmatmul.mubr.f32.gmra.mrb[22].mxu1 %v760_v34 }
 0x216   :  { %v1486_v35 = vpop.f32.mrb[24].mxu0 }
 0x217   :  { %v708_v36 = vadd.f32 %v1486_v35, %v2181_v61  ;;  %v702_v37 = vpop.f32.mrb[25].mxu0 }
 0x218   :  { %v703_v38 = vadd.f32 %v2181_v61, %v702_v37 }
 0x219   :  { %v736_v39 = vmul.f32 0.01, %v708_v36 }
 0x21a   :  { %v735_v40 = vmul.f32 0.01, %v703_v38 }
 0x21b   :  { %v762_v42 = vmax.f32 %v708_v36, %v736_v39 }
 0x21c   :  { %v761_v41 = vmax.f32 %v703_v38, %v735_v40 }
 0x21e   :  { %1555 = vmatprep.mubr.f32.mxu1 %v761_v41 }
 0x21f   :  { %1556 = vmatmul.mubr.f32.gmra.mrb[24].mxu1 %v762_v42 }
 0x275   :  { %v1521_v1 = vpop.f32.mrb[0].mxu1 }
 0x276   :  { %v858_v44 = vadd.f32 %v1521_v1, %v2212_v43  ;;  %v852_v45 = vpop.f32.mrb[1].mxu1 }
 0x277   :  { %v853_v60 = vadd.f32 %v2212_v43, %v852_v45 }
 0x278   :  { %v982_v46 = vmul.f32 0.01, %v858_v44 }
 0x279   :  { %v981_v47 = vmul.f32 0.01, %v853_v60 }
 0x27a   :  { %v1524_v61 = vpop.f32.mrb[2].mxu1  ;;  %v1008_v51 = vmax.f32 %v858_v44, %v982_v46 }
 0x27b   :  { %v1007_v48 = vmax.f32 %v853_v60, %v981_v47  ;;  %v868_v49 = vadd.f32 %v1524_v61, %v2212_v43  ;;  %v862_v50 = vpop.f32.mrb[3].mxu1 }
 0x27c   :  { %v863_v52 = vadd.f32 %v2212_v43, %v862_v50 }
 0x27d   :  { %v984_v53 = vmul.f32 0.01, %v868_v49  ;;  %1590 = vmatprep.mubr.f32.mxu0 %v1007_v48 }
 0x27e   :  { %v983_v56 = vmul.f32 0.01, %v863_v52  ;;  %v1527_v57 = vpop.f32.mrb[4].mxu1  ;;  %1591 = vmatmul.mubr.f32.vlgmr.msra.gmra.mrb[26].mxu0 %v1008_v51 }
 0x27f   :  { %v878_v59 = vadd.f32 %v1527_v57, %v2212_v43  ;;  %v872_v62 = vpop.f32.mrb[5].mxu1  ;;  %v1010_v0 = vmax.f32 %v868_v49, %v984_v53 }
 0x280   :  { %v1009_v54 = vmax.f32 %v863_v52, %v983_v56  ;;  %v873_v63 = vadd.f32 %v2212_v43, %v872_v62 }
 0x281   :  { %v986_v2 = vmul.f32 0.01, %v878_v59 }
 0x282   :  { %v985_v3 = vmul.f32 0.01, %v873_v63  ;;  %1593 = vmatprep.mubr.f32.mxu0 %v1009_v54 }
 0x283   :  { %1594 = vmatmul.mubr.f32.gmra.mrb[28].mxu0 %v1010_v0  ;;  %v1012_v6 = vmax.f32 %v878_v59, %v986_v2 }
 0x284   :  { %v1011_v4 = vmax.f32 %v873_v63, %v985_v3  ;;  %v1530_v5 = vpop.f32.mrb[6].mxu1 }
 0x285   :  { %v888_v7 = vadd.f32 %v1530_v5, %v2212_v43  ;;  %v882_v8 = vpop.f32.mrb[7].mxu1 }
 0x286   :  { %v883_v58 = vadd.f32 %v2212_v43, %v882_v8  ;;  %1596 = vmatprep.mubr.f32.mxu0 %v1011_v4 }
 0x287   :  { %v988_v9 = vmul.f32 0.01, %v888_v7  ;;  %1597 = vmatmul.mubr.f32.gmra.mrb[30].mxu0 %v1012_v6 }
 0x288   :  { %v987_v11 = vmul.f32 0.01, %v883_v58 }
 0x289   :  { %v1014_v13 = vmax.f32 %v888_v7, %v988_v9 }
 0x28a   :  { %v1013_v12 = vmax.f32 %v883_v58, %v987_v11 }
 0x28c   :  { %1599 = vmatprep.mubr.f32.mxu0 %v1013_v12 }
 0x28d   :  { %1600 = vmatmul.mubr.f32.gmra.mrb[32].mxu0 %v1014_v13 }
 0x292   :  { %v1533_v14 = vpop.f32.mrb[8].mxu1 }
 0x293   :  { %v898_v15 = vadd.f32 %v1533_v14, %v2212_v43  ;;  %v892_v16 = vpop.f32.mrb[9].mxu1 }
 0x294   :  { %v893_v17 = vadd.f32 %v2212_v43, %v892_v16 }
 0x295   :  { %v990_v10 = vmul.f32 0.01, %v898_v15 }
 0x296   :  { %v989_v18 = vmul.f32 0.01, %v893_v17 }
 0x297   :  { %v1016_v20 = vmax.f32 %v898_v15, %v990_v10 }
 0x298   :  { %v1015_v19 = vmax.f32 %v893_v17, %v989_v18 }
 0x29a   :  { %1602 = vmatprep.mubr.f32.mxu0 %v1015_v19 }
 0x29b   :  { %1603 = vmatmul.mubr.f32.gmra.mrb[34].mxu0 %v1016_v20 }
 0x29c   :  { %v1536_v21 = vpop.f32.mrb[10].mxu1 }
 0x29d   :  { %v908_v22 = vadd.f32 %v1536_v21, %v2212_v43  ;;  %v902_v23 = vpop.f32.mrb[11].mxu1 }
 0x29e   :  { %v903_v24 = vadd.f32 %v2212_v43, %v902_v23 }
 0x29f   :  { %v992_v25 = vmul.f32 0.01, %v908_v22 }
 0x2a0   :  { %v991_v26 = vmul.f32 0.01, %v903_v24 }
 0x2a1   :  { %v1018_v28 = vmax.f32 %v908_v22, %v992_v25  ;;  %v2243_v22 = vld [vmem:[%s2383_s8] ss:$0 sm:$0xff] }
 0x2a2   :  { %v1017_v27 = vmax.f32 %v903_v24, %v991_v26 }
 0x2a4   :  { %1605 = vmatprep.mubr.f32.mxu0 %v1017_v27 }
 0x2a5   :  { %1606 = vmatmul.mubr.f32.gmra.mrb[36].mxu0 %v1018_v28 }
 0x2aa   :  { %v1539_v29 = vpop.f32.mrb[12].mxu1 }
 0x2ab   :  { %v918_v30 = vadd.f32 %v1539_v29, %v2212_v43  ;;  %v912_v55 = vpop.f32.mrb[13].mxu1 }
 0x2ac   :  { %v913_v31 = vadd.f32 %v2212_v43, %v912_v55 }
 0x2ad   :  { %v994_v32 = vmul.f32 0.01, %v918_v30 }
 0x2ae   :  { %v993_v33 = vmul.f32 0.01, %v913_v31 }
 0x2af   :  { %v1020_v35 = vmax.f32 %v918_v30, %v994_v32 }
 0x2b0   :  { %v1019_v34 = vmax.f32 %v913_v31, %v993_v33 }
 0x2b2   :  { %1608 = vmatprep.mubr.f32.mxu0 %v1019_v34 }
 0x2b3   :  { %1609 = vmatmul.mubr.f32.gmra.mrb[38].mxu0 %v1020_v35 }
 0x2b4   :  { %v1542_v36 = vpop.f32.mrb[14].mxu1 }
 0x2b5   :  { %v928_v37 = vadd.f32 %v1542_v36, %v2212_v43  ;;  %v922_v38 = vpop.f32.mrb[15].mxu1 }
 0x2b6   :  { %v923_v39 = vadd.f32 %v2212_v43, %v922_v38 }
 0x2b7   :  { %v996_v40 = vmul.f32 0.01, %v928_v37 }
 0x2b8   :  { %v995_v41 = vmul.f32 0.01, %v923_v39 }
 0x2b9   :  { %v1022_v1 = vmax.f32 %v928_v37, %v996_v40 }
 0x2ba   :  { %v1021_v42 = vmax.f32 %v923_v39, %v995_v41 }
 0x2bc   :  { %1611 = vmatprep.mubr.f32.mxu1 %v1021_v42 }
 0x2bd   :  { %1612 = vmatmul.mubr.f32.vlgmr.msra.gmra.mrb[26].mxu1 %v1022_v1 }
 0x2c2   :  { %v1545_v44 = vpop.f32.mrb[16].mxu1 }
 0x2c3   :  { %v938_v45 = vadd.f32 %v1545_v44, %v2212_v43  ;;  %v932_v60 = vpop.f32.mrb[17].mxu1 }
 0x2c4   :  { %v933_v46 = vadd.f32 %v2212_v43, %v932_v60 }
 0x2c5   :  { %v998_v47 = vmul.f32 0.01, %v938_v45 }
 0x2c6   :  { %v997_v61 = vmul.f32 0.01, %v933_v46 }
 0x2c7   :  { %v1024_v49 = vmax.f32 %v938_v45, %v998_v47 }
 0x2c8   :  { %v1023_v48 = vmax.f32 %v933_v46, %v997_v61 }
 0x2ca   :  { %1614 = vmatprep.mubr.f32.mxu1 %v1023_v48 }
 0x2cb   :  { %1615 = vmatmul.mubr.f32.gmra.mrb[28].mxu1 %v1024_v49 }
 0x2cc   :  { %v1548_v50 = vpop.f32.mrb[18].mxu1 }
 0x2cd   :  { %v948_v51 = vadd.f32 %v1548_v50, %v2212_v43  ;;  %v942_v52 = vpop.f32.mrb[19].mxu1 }
 0x2ce   :  { %v943_v53 = vadd.f32 %v2212_v43, %v942_v52 }
 0x2cf   :  { %v1000_v56 = vmul.f32 0.01, %v948_v51 }
 0x2d0   :  { %v999_v57 = vmul.f32 0.01, %v943_v53 }
 0x2d1   :  { %v1026_v62 = vmax.f32 %v948_v51, %v1000_v56 }
 0x2d2   :  { %v1025_v59 = vmax.f32 %v943_v53, %v999_v57 }
 0x2d4   :  { %1617 = vmatprep.mubr.f32.mxu1 %v1025_v59 }
 0x2d5   :  { %1618 = vmatmul.mubr.f32.gmra.mrb[30].mxu1 %v1026_v62 }
 0x2da   :  { %v1551_v54 = vpop.f32.mrb[20].mxu1 }
 0x2db   :  { %v958_v63 = vadd.f32 %v1551_v54, %v2212_v43  ;;  %v952_v0 = vpop.f32.mrb[21].mxu1 }
 0x2dc   :  { %v953_v2 = vadd.f32 %v2212_v43, %v952_v0 }
 0x2dd   :  { %v1002_v3 = vmul.f32 0.01, %v958_v63 }
 0x2de   :  { %v1001_v4 = vmul.f32 0.01, %v953_v2 }
 0x2df   :  { %v1028_v6 = vmax.f32 %v958_v63, %v1002_v3 }
 0x2e0   :  { %v1027_v5 = vmax.f32 %v953_v2, %v1001_v4 }
 0x2e2   :  { %1620 = vmatprep.mubr.f32.mxu1 %v1027_v5 }
 0x2e3   :  { %1621 = vmatmul.mubr.f32.gmra.mrb[32].mxu1 %v1028_v6 }
 0x2e4   :  { %v1554_v7 = vpop.f32.mrb[22].mxu1 }
 0x2e5   :  { %v968_v8 = vadd.f32 %v1554_v7, %v2212_v43  ;;  %v962_v58 = vpop.f32.mrb[23].mxu1 }
 0x2e6   :  { %v963_v9 = vadd.f32 %v2212_v43, %v962_v58 }
 0x2e7   :  { %v1004_v11 = vmul.f32 0.01, %v968_v8 }
 0x2e8   :  { %v1003_v12 = vmul.f32 0.01, %v963_v9 }
 0x2e9   :  { %v1030_v14 = vmax.f32 %v968_v8, %v1004_v11 }
 0x2ea   :  { %v1029_v13 = vmax.f32 %v963_v9, %v1003_v12 }
 0x2ec   :  { %1623 = vmatprep.mubr.f32.mxu1 %v1029_v13 }
 0x2ed   :  { %1624 = vmatmul.mubr.f32.gmra.mrb[34].mxu1 %v1030_v14 }
 0x2f2   :  { %v1557_v15 = vpop.f32.mrb[24].mxu1 }
 0x2f3   :  { %v978_v16 = vadd.f32 %v1557_v15, %v2212_v43  ;;  %v972_v17 = vpop.f32.mrb[25].mxu1 }
 0x2f4   :  { %v973_v10 = vadd.f32 %v2212_v43, %v972_v17 }
 0x2f5   :  { %v1006_v18 = vmul.f32 0.01, %v978_v16 }
 0x2f6   :  { %v1005_v19 = vmul.f32 0.01, %v973_v10 }
 0x2f7   :  { %v1032_v21 = vmax.f32 %v978_v16, %v1006_v18 }
 0x2f8   :  { %v1031_v20 = vmax.f32 %v973_v10, %v1005_v19 }
 0x2fa   :  { %1626 = vmatprep.mubr.f32.mxu1 %v1031_v20 }
 0x2fb   :  { %1627 = vmatmul.mubr.f32.gmra.mrb[36].mxu1 %v1032_v21 }
 0x351   :  { %v1592_v23 = vpop.f32.mrb[26].mxu0 }
 0x352   :  { %v1128_v24 = vadd.f32 %v1592_v23, %v2243_v22  ;;  %v1122_v25 = vpop.f32.mrb[27].mxu0 }
 0x353   :  { %v1123_v26 = vadd.f32 %v2243_v22, %v1122_v25 }
 0x354   :  { %1253 = vst.msk [vmem:[%s2384_s9 + $0x8] sm:$0xff] %vm1251_vm0, %v1128_v24 }
 0x355   :  { %1252 = vst.msk [vmem:[%s2384_s9] sm:$0xff] %vm1251_vm0, %v1123_v26 }
 0x356   :  { %v1595_v43 = vpop.f32.mrb[28].mxu0 }
 0x357   :  { %v1138_v27 = vadd.f32 %v1595_v43, %v2243_v22  ;;  %v1132_v28 = vpop.f32.mrb[29].mxu0 }
 0x358   :  { %v1133_v29 = vadd.f32 %v2243_v22, %v1132_v28 }
 0x359   :  { %1255 = vst.msk [vmem:[%s2384_s9 + $0x18] sm:$0xff] %vm1251_vm0, %v1138_v27 }
 0x35a   :  { %1254 = vst.msk [vmem:[%s2384_s9 + $0x10] sm:$0xff] %vm1251_vm0, %v1133_v29  ;;  %v1598_v30 = vpop.f32.mrb[30].mxu0 }
 0x35b   :  { %v1148_v55 = vadd.f32 %v1598_v30, %v2243_v22  ;;  %v1142_v31 = vpop.f32.mrb[31].mxu0 }
 0x35c   :  { %v1143_v32 = vadd.f32 %v2243_v22, %v1142_v31 }
 0x35d   :  { %1257 = vst.msk [vmem:[%s2384_s9 + $0x28] sm:$0xff] %vm1251_vm0, %v1148_v55 }
 0x35e   :  { %1256 = vst.msk [vmem:[%s2384_s9 + $0x20] sm:$0xff] %vm1251_vm0, %v1143_v32 }
 0x360   :  { %v1601_v33 = vpop.f32.mrb[32].mxu0 }
 0x361   :  { %v1158_v34 = vadd.f32 %v1601_v33, %v2243_v22  ;;  %v1152_v35 = vpop.f32.mrb[33].mxu0 }
 0x362   :  { %v1153_v36 = vadd.f32 %v2243_v22, %v1152_v35 }
 0x363   :  { %1259 = vst.msk [vmem:[%s2384_s9 + $0x38] sm:$0xff] %vm1251_vm0, %v1158_v34 }
 0x364   :  { %1258 = vst.msk [vmem:[%s2384_s9 + $0x30] sm:$0xff] %vm1251_vm0, %v1153_v36 }
 0x36e   :  { %v1604_v37 = vpop.f32.mrb[34].mxu0 }
 0x36f   :  { %v1168_v38 = vadd.f32 %v1604_v37, %v2243_v22  ;;  %v1162_v39 = vpop.f32.mrb[35].mxu0 }
 0x370   :  { %v1163_v40 = vadd.f32 %v2243_v22, %v1162_v39 }
 0x371   :  { %1261 = vst.msk [vmem:[%s2384_s9 + $0x48] sm:$0xff] %vm1251_vm0, %v1168_v38 }
 0x372   :  { %1260 = vst.msk [vmem:[%s2384_s9 + $0x40] sm:$0xff] %vm1251_vm0, %v1163_v40 }
 0x378   :  { %v1607_v41 = vpop.f32.mrb[36].mxu0 }
 0x379   :  { %v1178_v42 = vadd.f32 %v1607_v41, %v2243_v22  ;;  %v1172_v1 = vpop.f32.mrb[37].mxu0 }
 0x37a   :  { %v1173_v44 = vadd.f32 %v2243_v22, %v1172_v1 }
 0x37b   :  { %1263 = vst.msk [vmem:[%s2384_s9 + $0x58] sm:$0xff] %vm1251_vm0, %v1178_v42 }
 0x37c   :  { %1262 = vst.msk [vmem:[%s2384_s9 + $0x50] sm:$0xff] %vm1251_vm0, %v1173_v44 }
 0x386   :  { %v1610_v45 = vpop.f32.mrb[38].mxu0 }
 0x387   :  { %v1188_v60 = vadd.f32 %v1610_v45, %v2243_v22  ;;  %v1182_v46 = vpop.f32.mrb[39].mxu0 }
 0x388   :  { %v1183_v47 = vadd.f32 %v2243_v22, %v1182_v46 }
 0x389   :  { %1265 = vst.msk [vmem:[%s2384_s9 + $0x68] sm:$0xff] %vm1251_vm0, %v1188_v60 }
 0x38a   :  { %1264 = vst.msk [vmem:[%s2384_s9 + $0x60] sm:$0xff] %vm1251_vm0, %v1183_v47 }
 0x390   :  { %v1613_v61 = vpop.f32.mrb[26].mxu1 }
 0x391   :  { %v1198_v48 = vadd.f32 %v1613_v61, %v2243_v22  ;;  %v1192_v49 = vpop.f32.mrb[27].mxu1 }
 0x392   :  { %v1193_v50 = vadd.f32 %v2243_v22, %v1192_v49 }
 0x393   :  { %1267 = vst.msk [vmem:[%s2384_s9 + $0x78] sm:$0xff] %vm1251_vm0, %v1198_v48 }
 0x394   :  { %1266 = vst.msk [vmem:[%s2384_s9 + $0x70] sm:$0xff] %vm1251_vm0, %v1193_v50 }
 0x39e   :  { %v1616_v51 = vpop.f32.mrb[28].mxu1 }
 0x39f   :  { %v1208_v52 = vadd.f32 %v1616_v51, %v2243_v22  ;;  %v1202_v53 = vpop.f32.mrb[29].mxu1 }
 0x3a0   :  { %v1203_v56 = vadd.f32 %v2243_v22, %v1202_v53 }
 0x3a1   :  { %1269 = vst.msk [vmem:[%s2384_s9 + $0x88] sm:$0xff] %vm1251_vm0, %v1208_v52 }
 0x3a2   :  { %1268 = vst.msk [vmem:[%s2384_s9 + $0x80] sm:$0xff] %vm1251_vm0, %v1203_v56 }
 0x3a8   :  { %v1619_v57 = vpop.f32.mrb[30].mxu1 }
 0x3a9   :  { %v1218_v59 = vadd.f32 %v1619_v57, %v2243_v22  ;;  %v1212_v62 = vpop.f32.mrb[31].mxu1 }
 0x3aa   :  { %v1213_v54 = vadd.f32 %v2243_v22, %v1212_v62 }
 0x3ab   :  { %1271 = vst.msk [vmem:[%s2384_s9 + $0x98] sm:$0xff] %vm1251_vm0, %v1218_v59 }
 0x3ac   :  { %1270 = vst.msk [vmem:[%s2384_s9 + $0x90] sm:$0xff] %vm1251_vm0, %v1213_v54 }
 0x3b6   :  { %v1622_v63 = vpop.f32.mrb[32].mxu1 }
 0x3b7   :  { %v1228_v0 = vadd.f32 %v1622_v63, %v2243_v22  ;;  %v1222_v2 = vpop.f32.mrb[33].mxu1 }
 0x3b8   :  { %v1223_v3 = vadd.f32 %v2243_v22, %v1222_v2 }
 0x3b9   :  { %1273 = vst.msk [vmem:[%s2384_s9 + $0xa8] sm:$0xff] %vm1251_vm0, %v1228_v0 }
 0x3ba   :  { %1272 = vst.msk [vmem:[%s2384_s9 + $0xa0] sm:$0xff] %vm1251_vm0, %v1223_v3 }
 0x3c0   :  { %v1625_v4 = vpop.f32.mrb[34].mxu1 }
 0x3c1   :  { %v1238_v5 = vadd.f32 %v1625_v4, %v2243_v22  ;;  %v1232_v6 = vpop.f32.mrb[35].mxu1 }
 0x3c2   :  { %v1233_v7 = vadd.f32 %v2243_v22, %v1232_v6 }
 0x3c3   :  { %1275 = vst.msk [vmem:[%s2384_s9 + $0xb8] sm:$0xff] %vm1251_vm0, %v1238_v5 }
 0x3c4   :  { %1274 = vst.msk [vmem:[%s2384_s9 + $0xb0] sm:$0xff] %vm1251_vm0, %v1233_v7 }
 0x3ce   :  { %v1628_v8 = vpop.f32.mrb[36].mxu1 }
 0x3cf   :  { %v1248_v58 = vadd.f32 %v1628_v8, %v2243_v22  ;;  %v1242_v9 = vpop.f32.mrb[37].mxu1 }
 0x3d0   :  { %v1243_v11 = vadd.f32 %v2243_v22, %v1242_v9 }
 0x3d1   :  { %1277 = vst.msk [vmem:[%s2384_s9 + $0xc8] sm:$0xff] %vm1251_vm0, %v1248_v58 }
 0x3d2   :  { %1276 = vst.msk [vmem:[%s2384_s9 + $0xc0] sm:$0xff] %vm1251_vm0, %v1243_v11 }
 0x3d3   :  { %1282 = vsyncpa [#allocation3], 1 }
 0x3d4   :  { %1283 = vsyncpa [#allocation5], 1 }

</bundles_post_ra>
